<compile_context>
chip_gen: v7x
topology: tpu7x:2x2x1
jax: 0.10.0
libtpu: 0.0.40
codegen_flags: <defaults>
</compile_context>

<pallas_src>
import functools

import jax
import jax.numpy as jnp
from jax.experimental import pallas as pl
from jax.experimental.pallas import tpu as pltpu


def _conv_bn_leaky_kernel(x_ref, w_ref, scale_ref, bias_ref, o_ref, *, kh, kw,
                          neg_slope):
    """One grid step = one (batch, H-tile) output block.

    x_ref:     (1, Hp, Wp, Cin)     bf16 padded input image (resident per batch)
    w_ref:     (kh*kw*Cin, Coutp)   bf16 conv weights, im2col layout (unscaled)
    scale_ref: (1, Coutp)           f32 BN scale  = gamma / sqrt(var + eps)
    bias_ref:  (1, Coutp)           f32 BN bias   = beta - mean * scale
    o_ref:     (1, tile_h, W, Coutp)
    """
    tile_h = o_ref.shape[1]
    wo = o_ref.shape[2]
    coutp = o_ref.shape[3]
    cin = x_ref.shape[3]

    row0 = pl.multiple_of(pl.program_id(1) * tile_h, tile_h)

    # im2col: kh*kw shifted taps of the halo window concatenated along the
    # contraction axis -> one big-K MXU matmul instead of kh*kw tiny-K dots.
    taps = []
    for i in range(kh):
        for j in range(kw):
            taps.append(x_ref[0, pl.ds(row0 + i, tile_h), j:j + wo, :])
    col = jnp.concatenate(taps, axis=-1).reshape(tile_h * wo, kh * kw * cin)

    acc = jnp.dot(col, w_ref[...], preferred_element_type=jnp.float32)

    # Epilogue: BN affine in f32 (fused) + LeakyReLU + cast + store.
    y = acc * scale_ref[...] + bias_ref[...]
    y = jnp.where(y > 0, y, neg_slope * y)
    o_ref[0] = y.reshape(tile_h, wo, coutp).astype(o_ref.dtype)


def _vmem_limit_bytes():
    cap = None
    try:
        cap = pltpu.get_tpu_info().vmem_capacity_bytes
    except Exception:  # fall back if the query is unavailable
        cap = None
    if not cap:
        cap = 64 * 1024 * 1024
    # Leave headroom: ~96 MiB on v5e/v6e (128 MiB physical), ~48 MiB on v7x.
    return int(min(cap * 3 // 4, 96 * 1024 * 1024))


def conv2d_bn_leaky(x_nchw, conv_w, gamma, beta, running_mean, running_var, *,
                    eps=1e-5, negative_slope=0.1, tile_h=None, out_dtype=None,
                    out_layout="NCHW"):
    N, Cin, H, W = x_nchw.shape
    Cout, _, kh, kw = conv_w.shape
    # NOTE: "same" padding formula matches the module; only exact for odd K.
    ph, pw = (kh - 1) // 2, (kw - 1) // 2
    halo_h = kh - 1
    out_dtype = x_nchw.dtype if out_dtype is None else out_dtype
    out_elt = jnp.dtype(out_dtype).itemsize

    LANE = 128
    # Small-Cout layers: keep the true Cout as the (full-dim) lane axis —
    # masked stores are far cheaper than a 128/Cout blow-up of output bytes.
    Coutp = Cout if Cout <= LANE else ((Cout + LANE - 1) // LANE) * LANE

    Wp = W + 2 * pw
    vmem_limit = _vmem_limit_bytes()

    # ---- tile_h from a full VMEM accounting (everything that is resident) ----
    if tile_h is None:
        budget = int(0.8 * vmem_limit)
        fixed = (2 * (H + 2 * ph + 8) * Wp * Cin * 2     # dbl-buffered bf16 image
                 + 2 * kh * kw * Cin * Coutp * 2         # resident bf16 weights
                 + 8 * Coutp * 4)                        # scale / bias
        per_row = W * (2 * Coutp * out_elt               # dbl-buffered out tile
                       + 4 * Coutp                       # f32 accumulator
                       + 4 * kh * kw * Cin)              # im2col + tap temps
        tile_h = int(max(1, min(H, (budget - fixed) // max(1, per_row))))
        if tile_h > 8:
            tile_h = (tile_h // 8) * 8
        # v7x megacore: if N is odd, prefer an even H-tile count so the
        # parallel grid splits evenly across the two TensorCores.
        n_th = pl.cdiv(H, tile_h)
        if (N % 2) == 1 and n_th > 1 and (n_th % 2) == 1:
            tile_h = pl.cdiv(H, n_th + 1)
    tile_h = int(min(max(int(tile_h), 1), H))
    n_th = pl.cdiv(H, tile_h)          # tile_h need not divide H
    H_out = n_th * tile_h              # extra rows computed on zero-pad, sliced off
    Hp = H_out + halo_h

    # ---- BN folded into f32 scale/bias applied in the kernel epilogue --------
    inv_std = 1.0 / jnp.sqrt(running_var.astype(jnp.float32) + eps)
    scale = gamma.astype(jnp.float32) * inv_std
    bias = beta.astype(jnp.float32) - running_mean.astype(jnp.float32) * scale
    scale_p = jnp.pad(scale, (0, Coutp - Cout)).reshape(1, Coutp)
    bias_p = jnp.pad(bias, (0, Coutp - Cout)).reshape(1, Coutp)

    # Conv weights in im2col layout (kh*kw*Cin, Coutp), bf16 (unscaled: the BN
    # scale stays in f32 in the epilogue for better accuracy).
    w2 = jnp.transpose(conv_w.astype(jnp.float32), (2, 3, 1, 0))
    w2 = w2.reshape(kh * kw * Cin, Cout)
    w2 = jnp.pad(w2, ((0, 0), (0, Coutp - Cout))).astype(jnp.bfloat16)

    # ---- input: ONE padded NHWC bf16 array (no halo-tile stack in HBM) -------
    x = jnp.transpose(x_nchw, (0, 2, 3, 1)).astype(jnp.bfloat16)
    x_pad = jnp.pad(x, ((0, 0), (ph, Hp - H - ph), (pw, pw), (0, 0)))

    kernel = functools.partial(_conv_bn_leaky_kernel, kh=kh, kw=kw,
                               neg_slope=negative_slope)

    out = pl.pallas_call(
        kernel,
        out_shape=jax.ShapeDtypeStruct((N, H_out, W, Coutp), out_dtype),
        grid_spec=pltpu.PrefetchScalarGridSpec(
            num_scalar_prefetch=0,
            grid=(N, n_th),
            in_specs=[
                # Whole padded image per batch: constant over t -> fetched from
                # HBM exactly once per batch element.
                pl.BlockSpec((1, Hp, Wp, Cin), lambda n, t: (n, 0, 0, 0)),
                # Weights / BN params resident (constant index maps).
                pl.BlockSpec((kh * kw * Cin, Coutp), lambda n, t: (0, 0)),
                pl.BlockSpec((1, Coutp), lambda n, t: (0, 0)),
                pl.BlockSpec((1, Coutp), lambda n, t: (0, 0)),
            ],
            out_specs=pl.BlockSpec((1, tile_h, W, Coutp),
                                   lambda n, t: (n, t, 0, 0)),
        ),
        compiler_params=pltpu.CompilerParams(
            dimension_semantics=("parallel", "parallel"),
            vmem_limit_bytes=vmem_limit),
    )(x_pad, w2, scale_p, bias_p)

    if H_out != H:
        out = out[:, :H]
    if Coutp != Cout:
        out = out[..., :Cout]
    if out_layout == "NHWC":       # cheaper for NHWC consumers (no extra pass)
        return out
    return jnp.transpose(out, (0, 3, 1, 2))


def reference(x_nchw, conv_w, gamma, beta, running_mean, running_var, eps=1e-5):
    kh = conv_w.shape[2]
    pad = (kh - 1) // 2
    y = jax.lax.conv_general_dilated(
        x_nchw, conv_w, window_strides=(1, 1),
        padding=((pad, pad), (pad, pad)),
        dimension_numbers=("NCHW", "OIHW", "NCHW"))
    m = running_mean[None, :, None, None]
    v = running_var[None, :, None, None]
    g = gamma[None, :, None, None]
    b = beta[None, :, None, None]
    y = g * (y - m) / jnp.sqrt(v + eps) + b
    return jnp.where(y > 0, y, 0.1 * y)


if __name__ == "__main__":
    N, Cin, Cout, H, W, K = 2, 4, 8, 16, 16, 3

    key = jax.random.PRNGKey(0)
    k1, k2, k3, k4, k5, k6 = jax.random.split(key, 6)
    x = jax.random.normal(k1, (N, Cin, H, W), jnp.float32)
    conv_w = 0.1 * jax.random.normal(k2, (Cout, Cin, K, K), jnp.float32)
    gamma = 1.0 + 0.1 * jax.random.normal(k3, (Cout,), jnp.float32)
    beta = 0.1 * jax.random.normal(k4, (Cout,), jnp.float32)
    running_mean = 0.1 * jax.random.normal(k5, (Cout,), jnp.float32)
    running_var = jnp.abs(1.0 + 0.1 * jax.random.normal(k6, (Cout,), jnp.float32))

    ref = reference(x, conv_w, gamma, beta, running_mean, running_var)

    # 1) auto tile_h (whole image in one tile for this small case)
    out = conv2d_bn_leaky(x, conv_w, gamma, beta, running_mean, running_var)
    out = jax.block_until_ready(out)
    assert out.shape == (N, Cout, H, W), out.shape
    assert jnp.allclose(out, ref, atol=3e-2, rtol=3e-2), float(
        jnp.max(jnp.abs(out - ref)))

    # 2) tile_h=5 (does not divide H=16): exercises multi-tile + padded last tile
    out2 = conv2d_bn_leaky(x, conv_w, gamma, beta, running_mean, running_var,
                           tile_h=5)
    out2 = jax.block_until_ready(out2)
    assert out2.shape == (N, Cout, H, W), out2.shape
    assert jnp.allclose(out2, ref, atol=3e-2, rtol=3e-2), float(
        jnp.max(jnp.abs(out2 - ref)))

    print("KERNEL_OK")
</pallas_src>

<mosaic_0001>
module attributes {stable_mosaic.version = 11 : i64} {
  func.func @_conv_bn_leaky_kernel(%arg0: i32, %arg1: i32, %arg2: memref<1x18x18x4xbf16, #tpu.memory_space<vmem>>, %arg3: memref<36x8xbf16, #tpu.memory_space<vmem>>, %arg4: memref<1x8xf32, #tpu.memory_space<vmem>>, %arg5: memref<1x8xf32, #tpu.memory_space<vmem>>, %arg6: memref<1x16x16x8xf32, #tpu.memory_space<vmem>>) attributes {dimension_semantics = [#tpu.dimension_semantics<parallel>, #tpu.dimension_semantics<parallel>], iteration_bounds = array<i64: 2, 1>, scalar_prefetch = 0 : i64, scratch_operands = 0 : i64, tpu.core_type = #tpu.core_type<tc>, window_params = [{transform_indices = @transform_0, window_bounds = array<i64: 1, 18, 18, 4>}, {pipeline_mode = #tpu.pipeline_mode<synchronous>, transform_indices = @transform_1, window_bounds = array<i64: 36, 8>}, {pipeline_mode = #tpu.pipeline_mode<synchronous>, transform_indices = @transform_2, window_bounds = array<i64: 1, 8>}, {pipeline_mode = #tpu.pipeline_mode<synchronous>, transform_indices = @transform_3, window_bounds = array<i64: 1, 8>}, {transform_indices = @transform_4, window_bounds = array<i64: 1, 16, 16, 8>}]} {
    %c16_i32 = arith.constant 16 : i32
    %0 = arith.muli %arg1, %c16_i32 : i32
    %1 = tpu.assume_multiple %0, 16 : i32
    %c0_i32 = arith.constant 0 : i32
    %2 = arith.addi %1, %c0_i32 : i32
    %c0 = arith.constant 0 : index
    %3 = arith.index_cast %2 : i32 to index
    %c0_0 = arith.constant 0 : index
    %c0_1 = arith.constant 0 : index
    %4 = vector.load %arg2[%c0, %3, %c0_0, %c0_1] : memref<1x18x18x4xbf16, #tpu.memory_space<vmem>>, vector<1x16x16x4xbf16>
    %5 = vector.shape_cast %4 : vector<1x16x16x4xbf16> to vector<16x16x4xbf16>
    %c0_i32_2 = arith.constant 0 : i32
    %6 = arith.addi %1, %c0_i32_2 : i32
    %c0_3 = arith.constant 0 : index
    %7 = arith.index_cast %6 : i32 to index
    %c1 = arith.constant 1 : index
    %c0_4 = arith.constant 0 : index
    %8 = vector.load %arg2[%c0_3, %7, %c1, %c0_4] : memref<1x18x18x4xbf16, #tpu.memory_space<vmem>>, vector<1x16x16x4xbf16>
    %9 = vector.shape_cast %8 : vector<1x16x16x4xbf16> to vector<16x16x4xbf16>
    %c0_i32_5 = arith.constant 0 : i32
    %10 = arith.addi %1, %c0_i32_5 : i32
    %c0_6 = arith.constant 0 : index
    %11 = arith.index_cast %10 : i32 to index
    %c2 = arith.constant 2 : index
    %c0_7 = arith.constant 0 : index
    %12 = vector.load %arg2[%c0_6, %11, %c2, %c0_7] : memref<1x18x18x4xbf16, #tpu.memory_space<vmem>>, vector<1x16x16x4xbf16>
    %13 = vector.shape_cast %12 : vector<1x16x16x4xbf16> to vector<16x16x4xbf16>
    %c1_i32 = arith.constant 1 : i32
    %14 = arith.addi %1, %c1_i32 : i32
    %c0_8 = arith.constant 0 : index
    %15 = arith.index_cast %14 : i32 to index
    %c0_9 = arith.constant 0 : index
    %c0_10 = arith.constant 0 : index
    %16 = vector.load %arg2[%c0_8, %15, %c0_9, %c0_10] : memref<1x18x18x4xbf16, #tpu.memory_space<vmem>>, vector<1x16x16x4xbf16>
    %17 = vector.shape_cast %16 : vector<1x16x16x4xbf16> to vector<16x16x4xbf16>
    %c1_i32_11 = arith.constant 1 : i32
    %18 = arith.addi %1, %c1_i32_11 : i32
    %c0_12 = arith.constant 0 : index
    %19 = arith.index_cast %18 : i32 to index
    %c1_13 = arith.constant 1 : index
    %c0_14 = arith.constant 0 : index
    %20 = vector.load %arg2[%c0_12, %19, %c1_13, %c0_14] : memref<1x18x18x4xbf16, #tpu.memory_space<vmem>>, vector<1x16x16x4xbf16>
    %21 = vector.shape_cast %20 : vector<1x16x16x4xbf16> to vector<16x16x4xbf16>
    %c1_i32_15 = arith.constant 1 : i32
    %22 = arith.addi %1, %c1_i32_15 : i32
    %c0_16 = arith.constant 0 : index
    %23 = arith.index_cast %22 : i32 to index
    %c2_17 = arith.constant 2 : index
    %c0_18 = arith.constant 0 : index
    %24 = vector.load %arg2[%c0_16, %23, %c2_17, %c0_18] : memref<1x18x18x4xbf16, #tpu.memory_space<vmem>>, vector<1x16x16x4xbf16>
    %25 = vector.shape_cast %24 : vector<1x16x16x4xbf16> to vector<16x16x4xbf16>
    %c2_i32 = arith.constant 2 : i32
    %26 = arith.addi %1, %c2_i32 : i32
    %c0_19 = arith.constant 0 : index
    %27 = arith.index_cast %26 : i32 to index
    %c0_20 = arith.constant 0 : index
    %c0_21 = arith.constant 0 : index
    %28 = vector.load %arg2[%c0_19, %27, %c0_20, %c0_21] : memref<1x18x18x4xbf16, #tpu.memory_space<vmem>>, vector<1x16x16x4xbf16>
    %29 = vector.shape_cast %28 : vector<1x16x16x4xbf16> to vector<16x16x4xbf16>
    %c2_i32_22 = arith.constant 2 : i32
    %30 = arith.addi %1, %c2_i32_22 : i32
    %c0_23 = arith.constant 0 : index
    %31 = arith.index_cast %30 : i32 to index
    %c1_24 = arith.constant 1 : index
    %c0_25 = arith.constant 0 : index
    %32 = vector.load %arg2[%c0_23, %31, %c1_24, %c0_25] : memref<1x18x18x4xbf16, #tpu.memory_space<vmem>>, vector<1x16x16x4xbf16>
    %33 = vector.shape_cast %32 : vector<1x16x16x4xbf16> to vector<16x16x4xbf16>
    %c2_i32_26 = arith.constant 2 : i32
    %34 = arith.addi %1, %c2_i32_26 : i32
    %c0_27 = arith.constant 0 : index
    %35 = arith.index_cast %34 : i32 to index
    %c2_28 = arith.constant 2 : index
    %c0_29 = arith.constant 0 : index
    %36 = vector.load %arg2[%c0_27, %35, %c2_28, %c0_29] : memref<1x18x18x4xbf16, #tpu.memory_space<vmem>>, vector<1x16x16x4xbf16>
    %37 = vector.shape_cast %36 : vector<1x16x16x4xbf16> to vector<16x16x4xbf16>
    %38 = tpu.concatenate %5, %9, %13, %17, %21, %25, %29, %33, %37 in 2 : vector<16x16x4xbf16>, vector<16x16x4xbf16>, vector<16x16x4xbf16>, vector<16x16x4xbf16>, vector<16x16x4xbf16>, vector<16x16x4xbf16>, vector<16x16x4xbf16>, vector<16x16x4xbf16>, vector<16x16x4xbf16> -> vector<16x16x36xbf16>
    %39 = vector.shape_cast %38 : vector<16x16x36xbf16> to vector<256x36xbf16>
    %c0_30 = arith.constant 0 : index
    %c0_31 = arith.constant 0 : index
    %40 = vector.load %arg3[%c0_30, %c0_31] : memref<36x8xbf16, #tpu.memory_space<vmem>>, vector<36x8xbf16>
    %cst = arith.constant dense<0.000000e+00> : vector<256x8xf32>
    %41 = tpu.matmul %39, %40, %cst {dimension_numbers = #tpu.dot_dimension_numbers<[1], [0], [0], [1], [0, 0, 1, 1], [], []>} : vector<256x36xbf16>, vector<36x8xbf16>, vector<256x8xf32> -> vector<256x8xf32>
    %c0_32 = arith.constant 0 : index
    %c0_33 = arith.constant 0 : index
    %42 = vector.load %arg4[%c0_32, %c0_33] : memref<1x8xf32, #tpu.memory_space<vmem>>, vector<1x8xf32>
    %43 = vector.broadcast %42 : vector<1x8xf32> to vector<256x8xf32>
    %44 = arith.mulf %41, %43 : vector<256x8xf32>
    %c0_34 = arith.constant 0 : index
    %c0_35 = arith.constant 0 : index
    %45 = vector.load %arg5[%c0_34, %c0_35] : memref<1x8xf32, #tpu.memory_space<vmem>>, vector<1x8xf32>
    %46 = vector.broadcast %45 : vector<1x8xf32> to vector<256x8xf32>
    %47 = arith.addf %44, %46 : vector<256x8xf32>
    %cst_36 = arith.constant 0.000000e+00 : f32
    %48 = vector.broadcast %cst_36 : f32 to vector<256x8xf32>
    %49 = arith.cmpf ogt, %47, %48 : vector<256x8xf32>
    %cst_37 = arith.constant 1.000000e-01 : f32
    %50 = vector.broadcast %cst_37 : f32 to vector<256x8xf32>
    %51 = arith.mulf %50, %47 : vector<256x8xf32>
    %52 = arith.select %49, %47, %51 : vector<256x8xi1>, vector<256x8xf32>
    %53 = vector.shape_cast %52 : vector<256x8xf32> to vector<16x16x8xf32>
    %c0_38 = arith.constant 0 : index
    %c0_39 = arith.constant 0 : index
    %c0_40 = arith.constant 0 : index
    %c0_41 = arith.constant 0 : index
    %54 = vector.load %arg6[%c0_38, %c0_39, %c0_40, %c0_41] : memref<1x16x16x8xf32, #tpu.memory_space<vmem>>, vector<1x16x16x8xf32>
    %55 = vector.shape_cast %54 : vector<1x16x16x8xf32> to vector<16x16x8xf32>
    %56 = vector.shape_cast %53 : vector<16x16x8xf32> to vector<1x16x16x8xf32>
    tpu.vector_store %arg6[%c0_38, %c0_39, %c0_40, %c0_41], %56 {strides = array<i32>} : memref<1x16x16x8xf32, #tpu.memory_space<vmem>>, vector<1x16x16x8xf32>,
    return
  }
  func.func @transform_0(%arg0: i32, %arg1: i32) -> (i32, i32, i32, i32) {
    %c0_i32 = arith.constant 0 : i32
    %c0_i32_0 = arith.constant 0 : i32
    %c0_i32_1 = arith.constant 0 : i32
    %c0_i32_2 = arith.constant 0 : i32
    return %arg0, %c0_i32, %c0_i32_0, %c0_i32_1 : i32, i32, i32, i32
  }
  func.func @transform_1(%arg0: i32, %arg1: i32) -> (i32, i32) {
    %c0_i32 = arith.constant 0 : i32
    %c0_i32_0 = arith.constant 0 : i32
    %c0_i32_1 = arith.constant 0 : i32
    return %c0_i32, %c0_i32_0 : i32, i32
  }
  func.func @transform_2(%arg0: i32, %arg1: i32) -> (i32, i32) {
    %c0_i32 = arith.constant 0 : i32
    %c0_i32_0 = arith.constant 0 : i32
    %c0_i32_1 = arith.constant 0 : i32
    return %c0_i32, %c0_i32_0 : i32, i32
  }
  func.func @transform_3(%arg0: i32, %arg1: i32) -> (i32, i32) {
    %c0_i32 = arith.constant 0 : i32
    %c0_i32_0 = arith.constant 0 : i32
    %c0_i32_1 = arith.constant 0 : i32
    return %c0_i32, %c0_i32_0 : i32, i32
  }
  func.func @transform_4(%arg0: i32, %arg1: i32) -> (i32, i32, i32, i32) {
    %c0_i32 = arith.constant 0 : i32
    %c0_i32_0 = arith.constant 0 : i32
    %c0_i32_1 = arith.constant 0 : i32
    return %arg0, %arg1, %c0_i32, %c0_i32_0 : i32, i32, i32, i32
  }
}

</mosaic_0001>

<bundles_post_ra>
// kernel: tpu_custom_call.1
= control target key start
LH: loop header
LB: loop body
LE: loop exit
PB: predicated region body
PF: predicated region fallthrough
CT: control target
= control target key end

     0   :  { %s3325_s15 = smov 0   ;;  %s3327_s16 = smov 0   ;;  %s4711_s0 = inlined_call_operand.vmem [shape: bf16[2,18,18,4], index: 0, kind: input, shape index: {}]   ;;  %s4712_s1 = inlined_call_operand.vmem [shape: bf16[36,8], index: 1, kind: input, shape index: {}]   ;;  %s4713_s2 = inlined_call_operand.vmem [shape: f32[1,8], index: 2, kind: input, shape index: {}]   ;;  %s4714_s3 = inlined_call_operand.vmem [shape: f32[1,8], index: 3, kind: input, shape index: {}]   ;;  %s4715_s4 = inlined_call_operand.vmem [shape: f32[2,16,16,8], index: 4, kind: output, shape index: {}]  }
   0x1   :  { %s3329_s17 = smov 0  }
   0x2 LB: > { %s26_s18 = sadd.s32 1, %s3286_s16  ;;  %p2723_p0 = scmp.ge.s32.totalorder %s3290_s17, 1  ;;  %s3290_s17 = sphi %s3329_s17, %s14_s17   ;;  %s3286_s16 = sphi %s3327_s16, %s4729_s16   ;;  %s3282_s15 = sphi %s3325_s15, %s4728_s15  }
   0x3   : > { %p28_p1 = scmp.ge.s32.totalorder %s26_s18, 2  ;;  %p176_p2 = scmp.lt.s32.totalorder %s3290_s17, 3 }
   0x5   : > { %s4731_s18 = smov (%p28_p1, %s26_s18), 0  ;;  %p177_p3 = pnand %p2723_p0, %p176_p2 }
   0x7   : > { %180 = sbr.rel (%p177_p3) target bundleno = 621 (0x26d), region = 36 }
   0xe   : > { %p207_p4 = scmp.lt.s32.totalorder %s3282_s15, 1  ;;  %s3292_s23 = smov 12   ;;  %vm829_vm0 = vcmask 1046528   ;;  %vm556_vm1 = vsmask.f32 7424  ;;  %vm2251_vm2 = vcmask 1041408  }
   0xf   : > { %s3293_s24 = smov 8   ;;  %s3294_s25 = smov 4   ;;  %vm1934_vm3 = vcmask 31744   ;;  %vm1967_vm4 = vcmask 64512   ;;  %vm2000_vm5 = vcmask 97280   ;;  %vm2033_vm6 = vcmask 130048  }
  0x10   : > { %s4733_s15 = smov (!%p207_p4, %s3282_s15), 1  ;;  %s3295_s26 = smov 16   ;;  %vm2066_vm7 = vcmask 162816   ;;  %vm2099_vm8 = vcmask 195584   ;;  %vm2132_vm9 = vcmask 228352   ;;  %vm2165_vm10 = vcmask 261120  }
  0x11   : > { %s3088_s19 = smul.u32 216, %s4733_s15  ;;  %s3296_s27 = smov 20   ;;  %vm2218_vm11 = vcmask 293888  }
  0x12   : > { %s3297_s30 = smov 24   ;;  %s3298_s7 = smov 28  }
  0x13   : > { %s3349_s22 = scalar_lea.vmem %s4711_s0, %s3088_s19  ;;  %s3299_s8 = smov 32  }
  0x14   : > { %v2743_v0 = vld [vmem:[%s3349_s22 + $0x6c] sm:$0xf]  ;;  %v3353_v1 = vld [vmem:[%s3349_s22 + $0x70] sm:$0xf]  ;;  %v245_v6 = vld [vmem:[%s3349_s22 + $0x64] sm:$0xf] }
  0x15   : > { %v3356_v2 = vcombine.low %v2743_v0, %v3353_v1  ;;  %v2727_v3 = vld [vmem:[%s3349_s22 + $0xc] sm:$0xf]  ;;  %v3360_v4 = vld [vmem:[%s3349_s22 + $0x10] sm:$0xf]  ;;  %v284_v7 = vld [vmem:[%s3349_s22 + $0x60] sm:$0xe] }
  0x16   : > { %v3363_v5 = vcombine.low %v2727_v3, %v3360_v4  ;;  %v3370_v8 = vld [vmem:[%s3349_s22 + $0x68] ss:$0 sps:$4 sm:$0x11]   ;;  %v2895_v9 = vcombine.low %v284_v7, %v245_v6  ;;  %v244_v10 = vld [vmem:[%s3349_s22 + $0x60] sm:$0xf]  ;;  %s3022_s19 = sshll.u32 %s4733_s15, 8 }
  0x17   : > { %1006 = vrot.lane.b32.xlu1 %v3356_v2, %s3292_s23  ;;  %v1169_v11 = vshll.u32 %v3356_v2, 16  ;;  %v229_v12 = vld [vmem:[%s3349_s22 + $0x4] sm:$0xf]  ;;  %v855_v14 = vrot.slane %v3370_v8, 1  ;;  %v276_v15 = vld [vmem:[%s3349_s22] sm:$0xe]  ;;  %v3381_v18 = vcombine.low %v244_v10, %v245_v6  ;;  %s4582_s21 = scalar_lea.vmem %s4715_s4, %s3022_s19 }
  0x18   : > { %990 = vrot.lane.b32.xlu0 %v3363_v5, %s3292_s23  ;;  %v854_v13 = vrot.slane %v2895_v9, 1  ;;  %v228_v16 = vld [vmem:[%s3349_s22] sm:$0xf]  ;;  %v1073_v17 = vshll.u32 %v3363_v5, 16  ;;  %v2887_v20 = vcombine.low %v276_v15, %v229_v12  ;;  %v246_v21 = vld [vmem:[%s3349_s22 + $0x6c] sm:$0xf] }
  0x19   : > { %v3128_v19 = vld [vmem:[%s3349_s22 + $0x8] ss:$0 sps:$4 sm:$0x11]   ;;  %v3386_v23 = vcombine.low %v228_v16, %v229_v12  ;;  %v247_v24 = vld [vmem:[%s3349_s22 + $0x70] sm:$0xf]  ;;  %v654_v30 = vshrl.u32 %v3381_v18, 16 }
  0x1a   : > { %v856_v22 = vsel %vm829_vm0, %v854_v13, %v855_v14  ;;  %v285_v25 = vld [vmem:[%s3349_s22 + $0x6c] sm:$0xe]  ;;  %v830_v26 = vrot.slane %v2887_v20, 1  ;;  %v831_v27 = vrot.slane %v3128_v19, 1  ;;  %v3393_v31 = vcombine.low %v246_v21, %v247_v24  ;;  %v231_v33 = vld [vmem:[%s3349_s22 + $0x10] sm:$0xf] }
  0x1b   : > { %894 = vrot.lane.b32.xlu1 %v856_v22, %s3293_s24  ;;  %v3132_v28 = vld [vmem:[%s3349_s22 + $0x74] ss:$0 sps:$4 sm:$0x11]   ;;  %v2896_v29 = vcombine.low %v285_v25, %v247_v24  ;;  %v230_v32 = vld [vmem:[%s3349_s22 + $0xc] sm:$0xf]  ;;  %v558_v41 = vshrl.u32 %v3386_v23, 16 }
  0x1c   : > { %v832_v34 = vsel %vm829_vm0, %v830_v26, %v831_v27  ;;  %v858_v36 = vrot.slane %v3132_v28, 1  ;;  %v277_v37 = vld [vmem:[%s3349_s22 + $0xc] sm:$0xe]  ;;  %v3399_v38 = vcombine.low %v230_v32, %v231_v33  ;;  %v3135_v39 = vld [vmem:[%s3349_s22 + $0x14] ss:$0 sps:$4 sm:$0x11]  }
  0x1d   : > { %v857_v35 = vrot.slane %v2896_v29, 1  ;;  %878 = vrot.lane.b32.xlu0 %v832_v34, %s3293_s24  ;;  %v2888_v40 = vcombine.low %v277_v37, %v231_v33  ;;  %v560_v42 = vshll.u32 %v3386_v23, 16  ;;  %v565_v43 = vshll.u32 %v3128_v19, 16  ;;  %v2745_v52 = vld [vmem:[%s3349_s22 + $0x78] sm:$0xf] }
  0x1e   : > { %v570_v45 = vshrl.u32 %v3399_v38, 16  ;;  %v572_v46 = vshll.u32 %v3399_v38, 16  ;;  %v666_v47 = vshrl.u32 %v3393_v31, 16  ;;  %v834_v49 = vrot.slane %v3135_v39, 1  ;;  %v3413_v57 = vld [vmem:[%s3349_s22 + $0x7c] sm:$0xf] }
  0x1f   : > { %v859_v44 = vsel %vm829_vm0, %v857_v35, %v858_v36  ;;  %v833_v48 = vrot.slane %v2888_v40, 1  ;;  %v577_v50 = vshll.u32 %v3135_v39, 16  ;;  %v562_v51 = vrot.slane %v560_v42, 1  ;;  %v2729_v62 = vld [vmem:[%s3349_s22 + $0x18] sm:$0xf] }
  0x20   : > { %896 = vrot.lane.b32.xlu1 %v859_v44, %s3293_s24  ;;  %v574_v53 = vrot.slane %v572_v46, 1  ;;  %v567_v54 = vrot.slane %v565_v43, 1  ;;  %v668_v55 = vshll.u32 %v3393_v31, 16  ;;  %v673_v56 = vshll.u32 %v3132_v28, 16  ;;  %v3419_v63 = vld [vmem:[%s3349_s22 + $0x1c] sm:$0xf] }
  0x21   : > { %v835_v58 = vsel %vm829_vm0, %v833_v48, %v834_v49  ;;  %v579_v59 = vrot.slane %v577_v50, 1  ;;  %v563_v60 = vor.u32 %v562_v51, %v558_v41  ;;  %v656_v61 = vshll.u32 %v3381_v18, 16  ;;  %v3426_v13 = vld [vmem:[%s3349_s22 + $0x74] ss:$0 sps:$4 sm:$0x11]  }
  0x22   : > { %880 = vrot.lane.b32.xlu0 %v835_v58, %s3293_s24  ;;  %v575_v0 = vor.u32 %v574_v53, %v570_v45  ;;  %v670_v3 = vrot.slane %v668_v55, 1  ;;  %v675_v6 = vrot.slane %v673_v56, 1  ;;  %v661_v7 = vshll.u32 %v3370_v8, 16  ;;  %v3431_v20 = vld [vmem:[%s3349_s22 + $0x14] ss:$0 sps:$4 sm:$0x11]  }
  0x23   : > { %v568_v9 = vsel %vm556_vm1, %v563_v60, %v567_v54  ;;  %v658_v10 = vrot.slane %v656_v61, 1  ;;  %v2912_v12 = vcombine.low %v2745_v52, %v3413_v57  ;;  %v2904_v19 = vcombine.low %v2729_v62, %v3419_v63  ;;  %v3438_v24 = vld [vmem:[%s3349_s22 + $0x80] ss:$0 sps:$4 sm:$0x11]   ;;  %v2783_v40 = vld [vmem:[%s3349_s22 + $0x6c] sm:$0xe] }
  0x24   : > { %v580_v14 = vsel %vm556_vm1, %v575_v0, %v579_v59  ;;  %v671_v15 = vor.u32 %v670_v3, %v666_v47  ;;  %v663_v16 = vrot.slane %v661_v7, 1  ;;  %v1167_v21 = vshrl.u32 %v3356_v2, 16  ;;  %v2775_v43 = vld [vmem:[%s3349_s22 + $0xc] sm:$0xe]  ;;  %v2784_v49 = vld [vmem:[%s3349_s22 + $0x78] sm:$0xe] }
  0x25   : > { %751 = vrot.lane.b32.xlu1 %v580_v14, %s3294_s25  ;;  %v659_v8 = vor.u32 %v658_v10, %v654_v30  ;;  %v1171_v22 = vrot.slane %v1169_v11, 1  ;;  %v1181_v26 = vshll.u32 %v2912_v12, 16  ;;  %v1174_v27 = vshll.u32 %v3426_v13, 16  ;;  %v3449_v11 = vld [vmem:[%s3349_s22 + $0x20] ss:$0 sps:$4 sm:$0x11]  }
  0x26   : > { %749 = vrot.lane.b32.xlu0 %v568_v9, %s3294_s25  ;;  %v676_v25 = vsel %vm556_vm1, %v671_v15, %v675_v6  ;;  %v1071_v28 = vshrl.u32 %v3363_v5, 16  ;;  %v1085_v30 = vshll.u32 %v2904_v19, 16  ;;  %v1075_v32 = vrot.slane %v1073_v17, 1  ;;  %v2776_v53 = vld [vmem:[%s3349_s22 + $0x18] sm:$0xe] }
  0x27   : > { %v664_v29 = vsel %vm556_vm1, %v659_v8, %v663_v16  ;;  %v1078_v2 = vshll.u32 %v3431_v20, 16  ;;  %v1172_v33 = vor.u32 %v1171_v22, %v1167_v21  ;;  %v1176_v34 = vrot.slane %v1174_v27, 1  ;;  %v2807_v54 = vld [vmem:[%s3349_s22 + $0x78] sm:$0xf]  ;;  %v3476_v60 = vld [vmem:[%s3349_s22 + $0x1c] sm:$0xf] }
  0x28   : > { %v1076_v35 = vor.u32 %v1075_v32, %v1071_v28  ;;  %v1179_v36 = vshrl.u32 %v2912_v12, 16  ;;  %v1183_v37 = vrot.slane %v1181_v26, 1  ;;  %v1186_v39 = vshll.u32 %v3438_v24, 16  ;;  %v2791_v55 = vld [vmem:[%s3349_s22 + $0x18] sm:$0xf] }
  0x29   : > { %767 = vrot.lane.b32.xlu1 %v676_v25, %s3294_s25  ;;  %v1080_v5 = vrot.slane %v1078_v2, 1  ;;  %v1083_v17 = vshrl.u32 %v2904_v19, 16  ;;  %v1087_v41 = vrot.slane %v1085_v30, 1  ;;  %v1090_v42 = vshll.u32 %v3449_v11, 16  ;;  %v2809_v7 = vld [vmem:[%s3349_s22 + $0x84] sm:$0xf] }
  0x2a   : > { %765 = vrot.lane.b32.xlu0 %v664_v29, %s3294_s25  ;;  %v2943_v44 = vcombine.low %v2783_v40, %v3353_v1  ;;  %v1177_v45 = vsel %vm556_vm1, %v1172_v33, %v1176_v34  ;;  %v1184_v46 = vor.u32 %v1183_v37, %v1179_v36  ;;  %v1188_v47 = vrot.slane %v1186_v39, 1  ;;  %v3468_v1 = vld [vmem:[%s3349_s22 + $0x7c] sm:$0xf]  ;;  %v3486_v9 = vld [vmem:[%s3349_s22 + $0x88] sm:$0xf] }
  0x2b   : > { %v2935_v48 = vcombine.low %v2775_v43, %v3360_v4  ;;  %v1081_v50 = vsel %vm556_vm1, %v1076_v35, %v1080_v5  ;;  %v1088_v51 = vor.u32 %v1087_v41, %v1083_v17  ;;  %v1092_v52 = vrot.slane %v1090_v42, 1  ;;  %v3493_v14 = vld [vmem:[%s3349_s22 + $0x28] sm:$0xf]  ;;  %v3499_v21 = vld [vmem:[%s3349_s22 + $0x80] ss:$0 sps:$4 sm:$0x11]  }
  0x2c   : > { %v2944_v56 = vcombine.low %v2784_v49, %v3413_v57  ;;  %v1189_v4 = vsel %vm556_vm1, %v1184_v46, %v1188_v47  ;;  %v1366_v58 = vrot.slane %v2943_v44, 1  ;;  %v1367_v59 = vrot.slane %v3426_v13, 1  ;;  %v2793_v13 = vld [vmem:[%s3349_s22 + $0x24] sm:$0xf]  ;;  %v248_v37 = vld [vmem:[%s3349_s22 + $0x78] sm:$0xf] }
  0x2d   : > { %1008 = vrot.lane.b32.xlu1 %v2912_v12, %s3292_s23  ;;  %v2936_v61 = vcombine.low %v2776_v53, %v3419_v63  ;;  %v1093_v62 = vsel %vm556_vm1, %v1088_v51, %v1092_v52  ;;  %v1342_v0 = vrot.slane %v2935_v48, 1  ;;  %v1343_v3 = vrot.slane %v3431_v20, 1  ;;  %v3506_v26 = vld [vmem:[%s3349_s22 + $0x20] ss:$0 sps:$4 sm:$0x11]  }
  0x2e   : > { %992 = vrot.lane.b32.xlu0 %v2904_v19, %s3292_s23  ;;  %v2959_v57 = vcombine.low %v2807_v54, %v3468_v1  ;;  %v2951_v6 = vcombine.low %v2791_v55, %v3476_v60  ;;  %v1368_v10 = vsel %vm829_vm0, %v1366_v58, %v1367_v59  ;;  %v1369_v63 = vrot.slane %v2944_v56, 1  ;;  %v3512_v34 = vld [vmem:[%s3349_s22 + $0x8c] ss:$0 sps:$4 sm:$0x11]   ;;  %v3521_v39 = vld [vmem:[%s3349_s22 + $0x7c] sm:$0xf] }
  0x2f   : > { %v1370_v12 = vrot.slane %v3438_v24, 1  ;;  %v1344_v15 = vsel %vm829_vm0, %v1342_v0, %v1343_v3  ;;  %v1345_v16 = vrot.slane %v2936_v61, 1  ;;  %v1346_v19 = vrot.slane %v3449_v11, 1  ;;  %v3517_v36 = vld [vmem:[%s3349_s22 + $0x2c] ss:$0 sps:$4 sm:$0x11]  }
  0x30   : > { %v1681_v20 = vshll.u32 %v2959_v57, 16  ;;  %v2960_v8 = vcombine.low %v2809_v7, %v3486_v9  ;;  %v1585_v22 = vshll.u32 %v2951_v6, 16  ;;  %v2952_v24 = vcombine.low %v2793_v13, %v3493_v14  ;;  %v232_v40 = vld [vmem:[%s3349_s22 + $0x18] sm:$0xf]  ;;  %v3525_v17 = vld [vmem:[%s3349_s22 + $0x1c] sm:$0xf] }
  0x31   : > { %1278 = vrot.lane.b32.xlu1 %v1177_v45, %s3295_s26  ;;  %v1371_v25 = vsel %vm829_vm0, %v1369_v63, %v1370_v12  ;;  %v1347_v27 = vsel %vm829_vm0, %v1345_v16, %v1346_v19  ;;  %v1679_v29 = vshrl.u32 %v2959_v57, 16  ;;  %v1686_v32 = vshll.u32 %v3499_v21, 16  ;;  %v3217_v41 = vld [vmem:[%s4712_s1] sm:$0xff]   ;;  %v2847_v42 = vld [vmem:[%s3349_s22 + $0x78] sm:$0xe]  ;;  %v3222_v56 = vld [vmem:[%s4712_s1 + $0x8] sm:$0xff]  }
  0x32   : > { %1262 = vrot.lane.b32.xlu0 %v1081_v50, %s3295_s26  ;;  %v1693_v28 = vshll.u32 %v2960_v8, 16  ;;  %v1683_v30 = vrot.slane %v1681_v20, 1  ;;  %v1597_v2 = vshll.u32 %v2952_v24, 16  ;;  %v1583_v11 = vshrl.u32 %v2951_v6, 16  ;;  %v2839_v47 = vld [vmem:[%s3349_s22 + $0x18] sm:$0xe]  ;;  %3042 = vmatprep.subr.bf16.mxu0 %v3217_v41 }
  0x33   : > { %v1587_v33 = vrot.slane %v1585_v22, 1  ;;  %v1590_v35 = vshll.u32 %v3506_v26, 16  ;;  %v1688_v43 = vrot.slane %v1686_v32, 1  ;;  %v1691_v44 = vshrl.u32 %v2960_v8, 16  ;;  %3080 = vmatprep.subr.bf16.mxu1 %v3217_v41  ;;  %3043 = vmatpush3.bf16.msra.mxu0 %v3217_v41  ;;  %v250_v7 = vld [vmem:[%s3349_s22 + $0x84] sm:$0xf] }
  0x34   : > { %v1684_v5 = vor.u32 %v1683_v30, %v1679_v29  ;;  %v1695_v45 = vrot.slane %v1693_v28, 1  ;;  %v1698_v46 = vshll.u32 %v3512_v34, 16  ;;  %v1595_v48 = vshrl.u32 %v2952_v24, 16  ;;  %3083 = vmatpush3.bf16.msra.mxu1 %v3217_v41  ;;  %v3549_v61 = vld [vmem:[%s3349_s22 + $0x80] ss:$0 sps:$4 sm:$0x11]   ;;  %3044 = vmatprep.subr.bf16.mxu0 %v3222_v56 }
  0x35   : > { %1280 = vrot.lane.b32.xlu1 %v1189_v4, %s3295_s26  ;;  %v1599_v49 = vrot.slane %v1597_v2, 1  ;;  %v1602_v50 = vshll.u32 %v3517_v36, 16  ;;  %v3537_v51 = vcombine.low %v248_v37, %v3521_v39  ;;  %v1588_v52 = vor.u32 %v1587_v33, %v1583_v11  ;;  %3081 = vmatprep.subr.bf16.mxu1 %v3222_v56  ;;  %v234_v13 = vld [vmem:[%s3349_s22 + $0x24] sm:$0xf] }
  0x36   : > { %1264 = vrot.lane.b32.xlu0 %v1093_v62, %s3295_s26  ;;  %v1592_v53 = vrot.slane %v1590_v35, 1  ;;  %v3540_v54 = vcombine.low %v232_v40, %v3525_v17  ;;  %v2991_v55 = vcombine.low %v2847_v42, %v3468_v1  ;;  %v2983_v4 = vcombine.low %v2839_v47, %v3476_v60  ;;  %v2848_v16 = vld [vmem:[%s3349_s22 + $0x84] sm:$0xe]  ;;  %v3591_v40 = vld [vmem:[%s3349_s22 + $0x8c] ss:$0 sps:$4 sm:$0x11]  }
  0x37   : > { %v1696_v58 = vor.u32 %v1695_v45, %v1691_v44  ;;  %v1700_v59 = vrot.slane %v1698_v46, 1  ;;  %v1689_v1 = vsel %vm556_vm1, %v1684_v5, %v1688_v43  ;;  %v1600_v62 = vor.u32 %v1599_v49, %v1595_v48  ;;  %3045 = vmatpush3.bf16.msra.mxu0 %v3222_v56 }
  0x38   : > { %v1604_v0 = vrot.slane %v1602_v50, 1  ;;  %v680_v3 = vshll.u32 %v3537_v51, 16  ;;  %v1593_v60 = vsel %vm556_vm1, %v1588_v52, %v1592_v53  ;;  %v1878_v63 = vrot.slane %v2991_v55, 1  ;;  %3084 = vmatpush3.bf16.msra.mxu1 %v3222_v56  ;;  %v286_v53 = vld [vmem:[%s3349_s22 + $0x78] sm:$0xe] }
  0x39   : > { %1406 = vrot.lane.b32.xlu1 %v1368_v10, %s3296_s27  ;;  %v3561_v10 = vld [vmem:[%s3349_s22 + $0x88] sm:$0xf]  ;;  %v1879_v12 = vrot.slane %v3499_v21, 1  ;;  %v1701_v19 = vsel %vm556_vm1, %v1696_v58, %v1700_v59  ;;  %v1854_v20 = vrot.slane %v2983_v4, 1  ;;  %v685_v22 = vshll.u32 %v3549_v61, 16 }
  0x3a   : > { %1390 = vrot.lane.b32.xlu0 %v1344_v15, %s3296_s27  ;;  %v3566_v15 = vld [vmem:[%s3349_s22 + $0x28] sm:$0xf]  ;;  %v1605_v21 = vsel %vm556_vm1, %v1600_v62, %v1604_v0  ;;  %v3578_v28 = vcombine.low %v250_v7, %v3561_v10  ;;  %v582_v29 = vshrl.u32 %v3540_v54, 16  ;;  %v2992_v2 = vcombine.low %v2848_v16, %v3486_v9  ;;  %v3596_v9 = vld [vmem:[%s3349_s22 + $0x2c] ss:$0 sps:$4 sm:$0x11]  }
  0x3b   : > { %v3583_v32 = vcombine.low %v234_v13, %v3566_v15  ;;  %v687_v33 = vrot.slane %v685_v22, 1  ;;  %v1880_v35 = vsel %vm829_vm0, %v1878_v63, %v1879_v12  ;;  %v1882_v45 = vrot.slane %v3512_v34, 1  ;;  %v279_v63 = vld [vmem:[%s3349_s22 + $0x24] sm:$0xe] }
  0x3c   : > { %v692_v5 = vshll.u32 %v3578_v28, 16  ;;  %v1881_v44 = vrot.slane %v2992_v2, 1  ;;  %v1858_v47 = vrot.slane %v3517_v36, 1  ;;  %v690_v49 = vshrl.u32 %v3578_v28, 16  ;;  %v278_v36 = vld [vmem:[%s3349_s22 + $0x18] sm:$0xe] }
  0x3d   : > { %1408 = vrot.lane.b32.xlu1 %v1371_v25, %s3296_s27  ;;  %v678_v25 = vshrl.u32 %v3537_v51, 16  ;;  %v697_v52 = vshll.u32 %v3591_v40, 16  ;;  %v594_v56 = vshrl.u32 %v3583_v32, 16  ;;  %v601_v4 = vshll.u32 %v3596_v9, 16 }
  0x3e   : > { %1392 = vrot.lane.b32.xlu0 %v1347_v27, %s3296_s27  ;;  %v682_v27 = vrot.slane %v680_v3, 1  ;;  %v694_v50 = vrot.slane %v692_v5, 1  ;;  %v1883_v58 = vsel %vm829_vm0, %v1881_v44, %v1882_v45  ;;  %v2897_v62 = vcombine.low %v286_v53, %v3521_v39  ;;  %v287_v3 = vld [vmem:[%s3349_s22 + $0x84] sm:$0xe] }
  0x3f   : > { %v2889_v0 = vcombine.low %v278_v36, %v3525_v17  ;;  %v603_v7 = vrot.slane %v601_v4, 1  ;;  %v861_v12 = vrot.slane %v3549_v61, 1  ;;  %v2898_v16 = vcombine.low %v287_v3, %v3561_v10 }
  0x40   : > { %v683_v37 = vor.u32 %v682_v27, %v678_v25  ;;  %v695_v59 = vor.u32 %v694_v50, %v690_v49  ;;  %v860_v17 = vrot.slane %v2897_v62, 1  ;;  %v2890_v61 = vcombine.low %v279_v63, %v3566_v15  ;;  %v3643_v15 = vld [vmem:[%s3349_s22 + $0x94] sm:$0xf]  ;;  %v2777_v62 = vld [vmem:[%s3349_s22 + $0x24] sm:$0xe] }
  0x41   : > { %1518 = vrot.lane.b32.xlu1 %v2959_v57, %s3297_s30  ;;  %v3555_v57 = vld [vmem:[%s3349_s22 + $0x20] ss:$0 sps:$4 sm:$0x11]   ;;  %v863_v10 = vrot.slane %v2898_v16, 1 }
  0x42   : > { %1502 = vrot.lane.b32.xlu0 %v2951_v6, %s3297_s30  ;;  %v584_v6 = vshll.u32 %v3540_v54, 16  ;;  %v688_v48 = vsel %vm556_vm1, %v683_v37, %v687_v33  ;;  %v837_v13 = vrot.slane %v3555_v57, 1  ;;  %v862_v27 = vsel %vm829_vm0, %v860_v17, %v861_v12  ;;  %v2733_v33 = vld [vmem:[%s3349_s22 + $0x30] sm:$0xf] }
  0x43   : > { %v839_v2 = vrot.slane %v2890_v61, 1  ;;  %v2786_v12 = vld [vmem:[%s3349_s22 + $0x90] sm:$0xe] }
  0x44   : > { %v586_v30 = vrot.slane %v584_v6, 1  ;;  %v2946_v61 = vcombine.low %v2786_v12, %v3643_v15 }
  0x45   : > { %1520 = vrot.lane.b32.xlu1 %v2960_v8, %s3297_s30  ;;  %v1855_v8 = vrot.slane %v3506_v26, 1  ;;  %v589_v26 = vshll.u32 %v3555_v57, 16  ;;  %v2731_v57 = vld [vmem:[%s3349_s22 + $0x24] sm:$0xf] }
  0x46   : > { %1504 = vrot.lane.b32.xlu0 %v2952_v24, %s3297_s30  ;;  %v2840_v24 = vld [vmem:[%s3349_s22 + $0x24] sm:$0xe]  ;;  %v587_v42 = vor.u32 %v586_v30, %v582_v29  ;;  %v2749_v30 = vld [vmem:[%s3349_s22 + $0x90] sm:$0xf] }
  0x47   : > { %v2984_v11 = vcombine.low %v2840_v24, %v3493_v14  ;;  %v1856_v41 = vsel %vm829_vm0, %v1854_v20, %v1855_v8  ;;  %v591_v43 = vrot.slane %v589_v26, 1  ;;  %v596_v14 = vshll.u32 %v3583_v32, 16  ;;  %v2747_v20 = vld [vmem:[%s3349_s22 + $0x84] sm:$0xf]  ;;  %v3627_v8 = vld [vmem:[%s3349_s22 + $0x88] sm:$0xf] }
  0x48   : > { %v3633_v24 = vld [vmem:[%s3349_s22 + $0x28] sm:$0xf]  ;;  %v2913_v25 = vcombine.low %v2747_v20, %v3627_v8 }
  0x49   : > { %1790 = vrot.lane.b32.xlu1 %v1689_v1, %s3298_s7  ;;  %v1857_v46 = vrot.slane %v2984_v11, 1  ;;  %v592_v55 = vsel %vm556_vm1, %v587_v42, %v591_v43  ;;  %v598_v34 = vrot.slane %v596_v14, 1  ;;  %v699_v1 = vrot.slane %v697_v52, 1  ;;  %v3177_v43 = vld [vmem:[%s3349_s22 + $0x8c] ss:$0 sps:$4 sm:$0x11]  }
  0x4a   : > { %1774 = vrot.lane.b32.xlu0 %v1593_v60, %s3298_s7  ;;  %v2905_v29 = vcombine.low %v2731_v57, %v3633_v24  ;;  %v840_v11 = vrot.slane %v3596_v9, 1  ;;  %v1193_v37 = vshll.u32 %v2913_v25, 16  ;;  %v3659_v14 = vld [vmem:[%s3349_s22 + $0x2c] ss:$0 sps:$4 sm:$0x11]   ;;  %v1191_v45 = vshrl.u32 %v2913_v25, 16 }
  0x4b   : > { %v1859_v60 = vsel %vm829_vm0, %v1857_v46, %v1858_v47  ;;  %v599_v6 = vor.u32 %v598_v34, %v594_v56  ;;  %v700_v39 = vsel %vm556_vm1, %v695_v59, %v699_v1  ;;  %v1198_v49 = vshll.u32 %v3177_v43, 16  ;;  %v3664_v52 = vld [vmem:[%s3349_s22 + $0x98] ss:$0 sps:$4 sm:$0x11]   ;;  %v2785_v56 = vld [vmem:[%s3349_s22 + $0x84] sm:$0xe] }
  0x4c   : > { %v841_v9 = vsel %vm829_vm0, %v839_v2, %v840_v11  ;;  %v1195_v46 = vrot.slane %v1193_v37, 1  ;;  %v1095_v47 = vshrl.u32 %v2905_v29, 16  ;;  %v1102_v53 = vshll.u32 %v3659_v14, 16  ;;  %v2811_v57 = vld [vmem:[%s3349_s22 + $0x90] sm:$0xf] }
  0x4d   : > { %1792 = vrot.lane.b32.xlu1 %v1701_v19, %s3298_s7  ;;  %v836_v19 = vrot.slane %v2889_v0, 1  ;;  %v604_v22 = vsel %vm556_vm1, %v599_v6, %v603_v7  ;;  %v1200_v36 = vrot.slane %v1198_v49, 1  ;;  %v1210_v1 = vshll.u32 %v3664_v52, 16  ;;  %v2813_v11 = vld [vmem:[%s3349_s22 + $0x9c] sm:$0xf] }
  0x4e   : > { %1776 = vrot.lane.b32.xlu0 %v1605_v21, %s3298_s7  ;;  %v864_v21 = vrot.slane %v3591_v40, 1  ;;  %v2914_v40 = vcombine.low %v2749_v30, %v3643_v15  ;;  %v1196_v34 = vor.u32 %v1195_v46, %v1191_v45  ;;  %v1104_v0 = vrot.slane %v1102_v53, 1  ;;  %v3697_v15 = vld [vmem:[%s3349_s22 + $0x34] sm:$0xf]  ;;  %v3714_v45 = vld [vmem:[%s3349_s22 + $0x40] sm:$0xf] }
  0x4f   : > { %v838_v26 = vsel %vm829_vm0, %v836_v19, %v837_v13  ;;  %v2945_v7 = vcombine.low %v2785_v56, %v3627_v8  ;;  %v2937_v63 = vcombine.low %v2777_v62, %v3633_v24  ;;  %v3688_v24 = vld [vmem:[%s3349_s22 + $0x94] sm:$0xf]  ;;  %v3717_v46 = vld [vmem:[%s3349_s22 + $0x98] ss:$0 sps:$4 sm:$0x11]  }
  0x50   : > { %v865_v5 = vsel %vm829_vm0, %v863_v10, %v864_v21  ;;  %v1205_v44 = vshll.u32 %v2914_v40, 16  ;;  %v1203_v4 = vshrl.u32 %v2914_v40, 16  ;;  %v1201_v13 = vsel %vm556_vm1, %v1196_v34, %v1200_v36  ;;  %v3723_v49 = vld [vmem:[%s3349_s22 + $0x38] ss:$0 sps:$4 sm:$0x11]  }
  0x51   : > { %1918 = vrot.lane.b32.xlu1 %v1880_v35, %s3299_s8  ;;  %v3649_v35 = vld [vmem:[%s3349_s22 + $0x34] sm:$0xf]  ;;  %v1372_v8 = vrot.slane %v2945_v7, 1  ;;  %v1373_v21 = vrot.slane %v3177_v43, 1  ;;  %v2961_v2 = vcombine.low %v2811_v57, %v3688_v24  ;;  %v1614_v62 = vshll.u32 %v3723_v49, 16 }
  0x52   : > { %1902 = vrot.lane.b32.xlu0 %v1856_v41, %s3299_s8  ;;  %v1097_v41 = vshll.u32 %v2905_v29, 16  ;;  %v2906_v42 = vcombine.low %v2733_v33, %v3649_v35  ;;  %v1207_v59 = vrot.slane %v1205_v44, 1  ;;  %v3702_v33 = vld [vmem:[%s3349_s22 + $0xa0] sm:$0xf] }
  0x53   : > { %v1374_v37 = vsel %vm829_vm0, %v1372_v8, %v1373_v21  ;;  %v1705_v44 = vshll.u32 %v2961_v2, 16  ;;  %v1703_v56 = vshrl.u32 %v2961_v2, 16  ;;  %v1616_v8 = vrot.slane %v1614_v62, 1 }
  0x54   : > { %v1099_v50 = vrot.slane %v1097_v41, 1  ;;  %v1107_v3 = vshrl.u32 %v2906_v42, 16  ;;  %v1208_v16 = vor.u32 %v1207_v59, %v1203_v4  ;;  %v1710_v4 = vshll.u32 %v3717_v46, 16  ;;  %v3734_v59 = vld [vmem:[%s3349_s22 + $0x44] ss:$0 sps:$4 sm:$0x11]  }
  0x55   : > { %769 = vrot.lane.b32.xlu1 %v688_v48, %s3294_s25  ;;  %v1109_v48 = vshll.u32 %v2906_v42, 16  ;;  %v1707_v34 = vrot.slane %v1705_v44, 1  ;;  %v2850_v44 = vld [vmem:[%s3349_s22 + $0x9c] sm:$0xe] }
  0x56   : > { %753 = vrot.lane.b32.xlu0 %v592_v55, %s3294_s25  ;;  %v3668_v55 = vld [vmem:[%s3349_s22 + $0x38] ss:$0 sps:$4 sm:$0x11]  }
  0x57   : > { %v1114_v6 = vshll.u32 %v3668_v55, 16  ;;  %v1352_v43 = vrot.slane %v3668_v55, 1  ;;  %v2849_v55 = vld [vmem:[%s3349_s22 + $0x90] sm:$0xe] }
  0x58   : > { %v2993_v7 = vcombine.low %v2849_v55, %v3688_v24  ;;  %v1861_v55 = vrot.slane %v3723_v49, 1 }
  0x59   : > { %1920 = vrot.lane.b32.xlu1 %v1883_v58, %s3299_s8  ;;  %v1100_v58 = vor.u32 %v1099_v50, %v1095_v47  ;;  %v1116_v20 = vrot.slane %v1114_v6, 1  ;;  %v3227_v6 = vld [vmem:[%s4712_s1 + $0x10] ss:$0 sps:$4 sm:$0x33]  }
  0x5a   : > { %1904 = vrot.lane.b32.xlu0 %v1859_v60, %s3299_s8  ;;  %v1111_v60 = vrot.slane %v1109_v48, 1  ;;  %3086 = vmatprep.subr.msk.bf16.mxu0 %vm2251_vm2, %v3227_v6 }
  0x5b   : > { %v1105_v17 = vsel %vm556_vm1, %v1100_v58, %v1104_v0  ;;  %v3731_v58 = vld [vmem:[%s3349_s22 + $0xa4] ss:$0 sps:$4 sm:$0x11]   ;;  %v252_v0 = vld [vmem:[%s3349_s22 + $0x90] sm:$0xf]  ;;  %3087 = vmatprep.subr.msk.bf16.mxu1 %vm2251_vm2, %v3227_v6 }
  0x5c   : > { %v1112_v19 = vor.u32 %v1111_v60, %v1107_v3  ;;  %v3740_v60 = vld [vmem:[%s3349_s22 + $0x94] sm:$0xf] }
  0x5d   : > { %771 = vrot.lane.b32.xlu1 %v700_v39, %s3294_s25  ;;  %v1212_v39 = vrot.slane %v1210_v1, 1  ;;  %v3755_v57 = vcombine.low %v252_v0, %v3740_v60 }
  0x5e   : > { %755 = vrot.lane.b32.xlu0 %v604_v22, %s3294_s25  ;;  %v2778_v22 = vld [vmem:[%s3349_s22 + $0x30] sm:$0xe]  ;;  %v1117_v30 = vsel %vm556_vm1, %v1112_v19, %v1116_v20  ;;  %v1722_v19 = vshll.u32 %v3731_v58, 16 }
  0x5f   : > { %v1213_v10 = vsel %vm556_vm1, %v1208_v16, %v1212_v39  ;;  %v3748_v16 = vld [vmem:[%s3349_s22 + $0x34] sm:$0xf]  ;;  %v1712_v39 = vrot.slane %v1710_v4, 1  ;;  %v2841_v20 = vld [vmem:[%s3349_s22 + $0x30] sm:$0xe]  ;;  %4720 = vst [vmem:[#allocation2_spill] sm:$0xff] %v3755_v57 }
  0x61   : > { %898 = vrot.lane.b32.xlu1 %v862_v27, %s3293_s24  ;;  %v1349_v27 = vrot.slane %v3659_v14, 1  ;;  %v2797_v14 = vld [vmem:[%s3349_s22 + $0x3c] sm:$0xf] }
  0x62   : > { %882 = vrot.lane.b32.xlu0 %v838_v26, %s3293_s24  ;;  %v2795_v26 = vld [vmem:[%s3349_s22 + $0x30] sm:$0xf]  ;;  %v2954_v53 = vcombine.low %v2797_v14, %v3714_v45  ;;  %v3779_v14 = vld [vmem:[%s3349_s22 + $0xa0] sm:$0xf] }
  0x64   : > { %v1621_v3 = vshll.u32 %v2954_v53, 16 }
  0x65   : > { %900 = vrot.lane.b32.xlu1 %v865_v5, %s3293_s24  ;;  %v2953_v5 = vcombine.low %v2795_v26, %v3697_v15  ;;  %v3764_v26 = vld [vmem:[%s3349_s22 + $0x98] ss:$0 sps:$4 sm:$0x11]  }
  0x66   : > { %884 = vrot.lane.b32.xlu0 %v841_v9, %s3293_s24  ;;  %v2962_v9 = vcombine.low %v2813_v11, %v3702_v33  ;;  %v1623_v24 = vrot.slane %v1621_v3, 1  ;;  %v1884_v11 = vrot.slane %v2993_v7, 1  ;;  %v709_v4 = vshll.u32 %v3764_v26, 16 }
  0x67   : > { %v1609_v48 = vshll.u32 %v2953_v5, 16  ;;  %v1607_v36 = vshrl.u32 %v2953_v5, 16  ;;  %v2994_v7 = vcombine.low %v2850_v44, %v3702_v33 }
  0x68   : > { %v1715_v12 = vshrl.u32 %v2962_v9, 16 }
  0x69   : > { %1010 = vrot.lane.b32.xlu1 %v2913_v25, %s3292_s23  ;;  %v1348_v25 = vrot.slane %v2937_v63, 1  ;;  %v1611_v1 = vrot.slane %v1609_v48, 1  ;;  %v1708_v63 = vor.u32 %v1707_v34, %v1703_v56  ;;  %v3784_v48 = vld [vmem:[%s3349_s22 + $0x40] sm:$0xf]  ;;  %v702_v56 = vshrl.u32 %v3755_v57, 16 }
  0x6a   : > { %994 = vrot.lane.b32.xlu0 %v2905_v29, %s3292_s23  ;;  %v2938_v29 = vcombine.low %v2778_v22, %v3649_v35  ;;  %v1375_v35 = vrot.slane %v2946_v61, 1  ;;  %v1619_v61 = vshrl.u32 %v2954_v53, 16 }
  0x6b   : > { %v1350_v41 = vsel %vm829_vm0, %v1348_v25, %v1349_v27  ;;  %v1612_v22 = vor.u32 %v1611_v1, %v1607_v36  ;;  %v2253_v25 = vsel %vm2251_vm2, %v3227_v6, 0  ;;  %v2985_v27 = vcombine.low %v2841_v20, %v3697_v15 }
  0x6c   : > { %3047 = vmatpush3.bf16.msra.mxu0 %v2253_v25  ;;  %3085 = vmatpush3.bf16.msra.mxu1 %v2253_v25  ;;  %v704_v15 = vshll.u32 %v3755_v57, 16  ;;  %v1888_v25 = vrot.slane %v3731_v58, 1 }
  0x6d   : > { %1012 = vrot.lane.b32.xlu1 %v2914_v40, %s3292_s23  ;;  %v1376_v40 = vrot.slane %v3664_v52, 1  ;;  %v1717_v52 = vshll.u32 %v2962_v9, 16 }
  0x6e   : > { %996 = vrot.lane.b32.xlu0 %v2906_v42, %s3292_s23  ;;  %v1351_v42 = vrot.slane %v2938_v29, 1  ;;  %v706_v34 = vrot.slane %v704_v15, 1  ;;  %v288_v15 = vld [vmem:[%s3349_s22 + $0x90] sm:$0xe] }
  0x6f   : > { %v1377_v47 = vsel %vm829_vm0, %v1375_v35, %v1376_v40  ;;  %v3771_v35 = vld [vmem:[%s3349_s22 + $0x38] ss:$0 sps:$4 sm:$0x11]   ;;  %v1617_v40 = vsel %vm556_vm1, %v1612_v22, %v1616_v8 }
  0x70   : > { %v1353_v50 = vsel %vm829_vm0, %v1351_v42, %v1352_v43  ;;  %v613_v36 = vshll.u32 %v3771_v35, 16 }
  0x71   : > { %1282 = vrot.lane.b32.xlu1 %v1201_v13, %s3295_s26  ;;  %v236_v13 = vld [vmem:[%s3349_s22 + $0x30] sm:$0xf] }
  0x72   : > { %1266 = vrot.lane.b32.xlu0 %v1105_v17, %s3295_s26  ;;  %v1719_v17 = vrot.slane %v1717_v52, 1  ;;  %v3759_v21 = vcombine.low %v236_v13, %v3748_v16  ;;  %v707_v13 = vor.u32 %v706_v34, %v702_v56 }
  0x74   : > { %4721 = vst [vmem:[#allocation3_spill] sm:$0xff] %v3759_v21  ;;  %v1720_v29 = vor.u32 %v1719_v17, %v1715_v12  ;;  %v608_v43 = vshll.u32 %v3759_v21, 16  ;;  %v606_v0 = vshrl.u32 %v3759_v21, 16  ;;  %v615_v17 = vrot.slane %v613_v36, 1 }
  0x75   : > { %1284 = vrot.lane.b32.xlu1 %v1213_v10, %s3295_s26  ;;  %v1626_v10 = vshll.u32 %v3734_v59, 16 }
  0x76   : > { %1268 = vrot.lane.b32.xlu0 %v1117_v30, %s3295_s26  ;;  %v1724_v30 = vrot.slane %v1722_v19, 1  ;;  %v610_v3 = vrot.slane %v608_v43, 1  ;;  %v3812_v19 = vld [vmem:[%s3349_s22 + $0xa4] ss:$0 sps:$4 sm:$0x11]  }
  0x77   : > { %v1628_v42 = vrot.slane %v1626_v10, 1  ;;  %v1887_v10 = vrot.slane %v2994_v7, 1  ;;  %v280_v43 = vld [vmem:[%s3349_s22 + $0x30] sm:$0xe] }
  0x78   : > { %v1725_v52 = vsel %vm556_vm1, %v1720_v29, %v1724_v30  ;;  %v611_v8 = vor.u32 %v610_v3, %v606_v0  ;;  %v1864_v29 = vrot.slane %v3734_v59, 1  ;;  %v2891_v34 = vcombine.low %v280_v43, %v3748_v16  ;;  %v2751_v3 = vld [vmem:[%s3349_s22 + $0x9c] sm:$0xf] }
  0x79   : > { %1410 = vrot.lane.b32.xlu1 %v1374_v37, %s3296_s27  ;;  %v1885_v37 = vrot.slane %v3717_v46, 1  ;;  %v2842_v46 = vld [vmem:[%s3349_s22 + $0x3c] sm:$0xe]  ;;  %v1889_v44 = vsel %vm829_vm0, %v1887_v10, %v1888_v25  ;;  %v867_v0 = vrot.slane %v3764_v26, 1  ;;  %v2753_v25 = vld [vmem:[%s3349_s22 + $0xa8] sm:$0xf] }
  0x7a   : > { %1394 = vrot.lane.b32.xlu0 %v1350_v41, %s3296_s27  ;;  %v1624_v41 = vor.u32 %v1623_v24, %v1619_v61 }
  0x7b   : > { %v1886_v12 = vsel %vm829_vm0, %v1884_v11, %v1885_v37  ;;  %v721_v37 = vshll.u32 %v3812_v19, 16 }
  0x7c   : > { %v1629_v62 = vsel %vm556_vm1, %v1624_v41, %v1628_v42 }
  0x7d   : > { %1412 = vrot.lane.b32.xlu1 %v1377_v47, %s3296_s27  ;;  %v238_v47 = vld [vmem:[%s3349_s22 + $0x3c] sm:$0xf] }
  0x7e   : > { %1396 = vrot.lane.b32.xlu0 %v1353_v50, %s3296_s27  ;;  %v3802_v49 = vcombine.low %v238_v47, %v3784_v48 }
  0x80   : > { %4723 = vst [vmem:[#allocation5_spill] sm:$0xff] %v3802_v49  ;;  %v620_v61 = vshll.u32 %v3802_v49, 16  ;;  %v618_v41 = vshrl.u32 %v3802_v49, 16 }
  0x81   : > { %1522 = vrot.lane.b32.xlu1 %v2961_v2, %s3297_s30  ;;  %v1713_v2 = vsel %vm556_vm1, %v1708_v63, %v1712_v39  ;;  %v2986_v63 = vcombine.low %v2842_v46, %v3714_v45  ;;  %v711_v39 = vrot.slane %v709_v4, 1  ;;  %v3819_v45 = vld [vmem:[%s3349_s22 + $0x44] ss:$0 sps:$4 sm:$0x11]   ;;  %v723_v46 = vrot.slane %v721_v37, 1 }
  0x82   : > { %1506 = vrot.lane.b32.xlu0 %v2953_v5, %s3297_s30  ;;  %v622_v42 = vrot.slane %v620_v61, 1  ;;  %v625_v58 = vshll.u32 %v3819_v45, 16  ;;  %v289_v4 = vld [vmem:[%s3349_s22 + $0x9c] sm:$0xe] }
  0x83   : > { %v712_v30 = vsel %vm556_vm1, %v707_v13, %v711_v39  ;;  %v842_v39 = vrot.slane %v2891_v34, 1 }
  0x84   : > { %v627_v56 = vrot.slane %v625_v58, 1 }
  0x85   : > { %1524 = vrot.lane.b32.xlu1 %v2962_v9, %s3297_s30  ;;  %v254_v9 = vld [vmem:[%s3349_s22 + $0x9c] sm:$0xf] }
  0x86   : > { %1508 = vrot.lane.b32.xlu0 %v2954_v53, %s3297_s30  ;;  %v1860_v53 = vrot.slane %v2985_v27, 1  ;;  %v3797_v1 = vcombine.low %v254_v9, %v3779_v14  ;;  %v1863_v27 = vrot.slane %v2986_v63, 1  ;;  %v2899_v9 = vcombine.low %v288_v15, %v3740_v60  ;;  %v281_v60 = vld [vmem:[%s3349_s22 + $0x3c] sm:$0xe]  ;;  %v2737_v15 = vld [vmem:[%s3349_s22 + $0x48] sm:$0xf] }
  0x87   : > { %v2900_v63 = vcombine.low %v289_v4, %v3779_v14  ;;  %v2892_v26 = vcombine.low %v281_v60, %v3784_v48 }
  0x88   : > { %4722 = vst [vmem:[#allocation4_spill] sm:$0xff] %v3797_v1  ;;  %v716_v20 = vshll.u32 %v3797_v1, 16  ;;  %v1862_v33 = vsel %vm829_vm0, %v1860_v53, %v1861_v55  ;;  %v1865_v53 = vsel %vm829_vm0, %v1863_v27, %v1864_v29  ;;  %v623_v55 = vor.u32 %v622_v42, %v618_v41  ;;  %v3878_v27 = vld [vmem:[%s3349_s22 + $0xac] sm:$0xf] }
  0x89   : > { %v3774_v5 = vpop.permute.xlu1 %1006  ;;  %1794 = vrot.lane.b32.xlu1 %v1713_v2, %s3298_s7  ;;  %v714_v2 = vshrl.u32 %v3797_v1, 16  ;;  %v869_v10 = vrot.slane %v2900_v63, 1  ;;  %v2916_v41 = vcombine.low %v2753_v25, %v3878_v27  ;;  %v3893_v42 = vld [vmem:[%s3349_s22 + $0xa4] ss:$0 sps:$4 sm:$0x11]  }
  0x8a   : > { %v3788_v50 = vpop.permute.xlu0 %990  ;;  %1778 = vrot.lane.b32.xlu0 %v1617_v40, %s3298_s7  ;;  %v718_v11 = vrot.slane %v716_v20, 1  ;;  %v616_v40 = vsel %vm556_vm1, %v611_v8, %v615_v17  ;;  %v628_v13 = vsel %vm556_vm1, %v623_v55, %v627_v56  ;;  %v843_v17 = vrot.slane %v3771_v35, 1  ;;  %v2735_v20 = vld [vmem:[%s3349_s22 + $0x3c] sm:$0xf] }
  0x8b   : > { %v870_v35 = vrot.slane %v3812_v19, 1  ;;  %v1229_v55 = vshll.u32 %v2916_v41, 16  ;;  %v1222_v34 = vshll.u32 %v3893_v42, 16  ;;  %v3916_v63 = vld [vmem:[%s3349_s22 + $0x50] ss:$0 sps:$4 sm:$0x11]  }
  0x8c   : > { %v719_v47 = vor.u32 %v718_v11, %v714_v2  ;;  %v845_v2 = vrot.slane %v2892_v26, 1  ;;  %v846_v11 = vrot.slane %v3819_v45, 1  ;;  %v2787_v26 = vld [vmem:[%s3349_s22 + $0x9c] sm:$0xe] }
  0x8d   : > { %v3804_v6 = vpop.permute.xlu1 %894  ;;  %1796 = vrot.lane.b32.xlu1 %v1725_v52, %s3298_s7  ;;  %v871_v58 = vsel %vm829_vm0, %v869_v10, %v870_v35  ;;  %v1231_v10 = vrot.slane %v1229_v55, 1  ;;  %v2779_v25 = vld [vmem:[%s3349_s22 + $0x3c] sm:$0xe] }
  0x8e   : > { %1780 = vrot.lane.b32.xlu0 %v1629_v62, %s3298_s7  ;;  %v866_v62 = vrot.slane %v2899_v9, 1  ;;  %v724_v7 = vsel %vm556_vm1, %v719_v47, %v723_v46  ;;  %v3898_v9 = vld [vmem:[%s3349_s22 + $0x44] ss:$0 sps:$4 sm:$0x11]  }
  0x8f   : > { %v3815_v22 = vpop.permute.xlu0 %878 }
  0x90   : > { %v868_v61 = vsel %vm829_vm0, %v866_v62, %v867_v0  ;;  %v3910_v62 = vld [vmem:[%s3349_s22 + $0xb0] ss:$0 sps:$4 sm:$0x11]  }
  0x91   : > { %1922 = vrot.lane.b32.xlu1 %v1886_v12, %s3299_s8  ;;  %v3857_v12 = vld [vmem:[%s3349_s22 + $0xa0] sm:$0xf]  ;;  %v1234_v35 = vshll.u32 %v3910_v62, 16 }
  0x92   : > { %v3823_v24 = vpop.permute.xlu1 %896  ;;  %1906 = vrot.lane.b32.xlu0 %v1862_v33, %s3299_s8  ;;  %v3866_v33 = vld [vmem:[%s3349_s22 + $0x40] sm:$0xf]  ;;  %v2915_v14 = vcombine.low %v2751_v3, %v3857_v12 }
  0x93   : > { %v2907_v48 = vcombine.low %v2735_v20, %v3866_v33  ;;  %v1224_v20 = vrot.slane %v1222_v34, 1  ;;  %v1236_v34 = vrot.slane %v1234_v35, 1 }
  0x94   : > { %v3835_v59 = vpop.permute.xlu0 %880  ;;  %v1217_v19 = vshll.u32 %v2915_v14, 16 }
  0x95   : > { %773 = vrot.lane.b32.xlu1 %v712_v30, %s3294_s25  ;;  %v844_v30 = vsel %vm829_vm0, %v842_v39, %v843_v17  ;;  %v1121_v43 = vshll.u32 %v2907_v48, 16  ;;  %v1119_v4 = vshrl.u32 %v2907_v48, 16  ;;  %v1227_v17 = vshrl.u32 %v2916_v41, 16 }
  0x96   : > { %757 = vrot.lane.b32.xlu0 %v616_v40, %s3294_s25  ;;  %v3888_v40 = vld [vmem:[%s3349_s22 + $0x4c] sm:$0xf]  ;;  %v1219_v56 = vrot.slane %v1217_v19, 1 }
  0x97   : > { %v3842_v52 = vpop.permute.xlu1 %751  ;;  %v2908_v47 = vcombine.low %v2737_v15, %v3888_v40  ;;  %v1123_v60 = vrot.slane %v1121_v43, 1  ;;  %v1138_v15 = vshll.u32 %v3916_v63, 16  ;;  %v3932_v43 = vld [vmem:[%s3349_s22 + $0xac] sm:$0xf] }
  0x98   : > { %v3847_v36 = vpop.permute.xlu0 %749 }
  0x99   : > { %1924 = vrot.lane.b32.xlu1 %v1889_v44, %s3299_s8  ;;  %v847_v44 = vsel %vm829_vm0, %v845_v2, %v846_v11  ;;  %v1133_v3 = vshll.u32 %v2908_v47, 16  ;;  %v1131_v11 = vshrl.u32 %v2908_v47, 16 }
  0x9a   : > { %1908 = vrot.lane.b32.xlu0 %v1865_v53, %s3299_s8  ;;  %v1215_v53 = vshrl.u32 %v2915_v14, 16 }
  0x9b   : > { %v3859_v16 = vpop.permute.xlu1 %767 }
  0x9c   : > { %v3868_v8 = vpop.permute.xlu0 %765  ;;  %v1220_v39 = vor.u32 %v1219_v56, %v1215_v53  ;;  %v2788_v53 = vld [vmem:[%s3349_s22 + $0xa8] sm:$0xe]  ;;  %v1232_v56 = vor.u32 %v1231_v10, %v1227_v17  ;;  %v3958_v10 = vld [vmem:[%s3349_s22 + $0xb8] sm:$0xf] }
  0x9d   : > { %775 = vrot.lane.b32.xlu1 %v724_v7, %s3294_s25  ;;  %v1126_v7 = vshll.u32 %v3898_v9, 16  ;;  %v2948_v17 = vcombine.low %v2788_v53, %v3878_v27  ;;  %v3966_v27 = vld [vmem:[%s3349_s22 + $0x58] sm:$0xf] }
  0x9e   : > { %759 = vrot.lane.b32.xlu0 %v628_v13, %s3294_s25  ;;  %v1225_v55 = vsel %vm556_vm1, %v1220_v39, %v1224_v20  ;;  %v3951_v39 = vld [vmem:[%s3349_s22 + $0x4c] sm:$0xf]  ;;  %v1379_v20 = vrot.slane %v3893_v42, 1 }
  0x9f   : > { %v3880_v29 = vpop.permute.xlu1 %1008  ;;  %v1128_v2 = vrot.slane %v1126_v7, 1  ;;  %v1140_v7 = vrot.slane %v1138_v15, 1 }
  0xa0   : > { %v3884_v37 = vpop.permute.xlu0 %992 }
  0xa1   : > { %902 = vrot.lane.b32.xlu1 %v868_v61, %s3293_s24  ;;  %v1124_v61 = vor.u32 %v1123_v60, %v1119_v4  ;;  %v2780_v4 = vld [vmem:[%s3349_s22 + $0x48] sm:$0xe] }
  0xa2   : > { %886 = vrot.lane.b32.xlu0 %v844_v30, %s3293_s24  ;;  %v2940_v35 = vcombine.low %v2780_v4, %v3888_v40  ;;  %v3976_v40 = vld [vmem:[%s3349_s22 + $0xb0] ss:$0 sps:$4 sm:$0x11]   ;;  %v1382_v4 = vrot.slane %v3910_v62, 1 }
  0xa3   : > { %v3900_v45 = vpop.permute.xlu1 %1278 }
  0xa4   : > { %v3904_v46 = vpop.permute.xlu0 %1262 }
  0xa5   : > { %904 = vrot.lane.b32.xlu1 %v871_v58, %s3293_s24  ;;  %v2815_v58 = vld [vmem:[%s3349_s22 + $0xa8] sm:$0xf] }
  0xa6   : > { %888 = vrot.lane.b32.xlu0 %v847_v44, %s3293_s24  ;;  %v2939_v44 = vcombine.low %v2779_v25, %v3866_v33  ;;  %v1237_v25 = vsel %vm556_vm1, %v1232_v56, %v1236_v34 }
  0xa7   : > { %v3912_v0 = vpop.permute.xlu1 %1280 }
  0xa8   : > { %v3918_v13 = vpop.permute.xlu0 %1264 }
  0xa9   : > { %1014 = vrot.lane.b32.xlu1 %v2915_v14, %s3292_s23  ;;  %v1135_v14 = vrot.slane %v1133_v3, 1  ;;  %v1129_v3 = vsel %vm556_vm1, %v1124_v61, %v1128_v2  ;;  %v2817_v61 = vld [vmem:[%s3349_s22 + $0xb4] sm:$0xf]  ;;  %v1354_v2 = vrot.slane %v2939_v44, 1 }
  0xaa   : > { %998 = vrot.lane.b32.xlu0 %v2907_v48, %s3292_s23  ;;  %v2947_v48 = vcombine.low %v2787_v26, %v3857_v12  ;;  %v3981_v44 = vcombine.low %v2817_v61, %v3958_v10 }
  0xab   : > { %v3925_v30 = vpop.permute.xlu1 %1406  ;;  %v1136_v12 = vor.u32 %v1135_v14, %v1131_v11  ;;  %v1355_v11 = vrot.slane %v3898_v9, 1  ;;  %v2801_v14 = vld [vmem:[%s3349_s22 + $0x54] sm:$0xf] }
  0xac   : > { %v3928_v19 = vpop.permute.xlu0 %1390  ;;  %v1378_v26 = vrot.slane %v2947_v48, 1  ;;  %v3986_v56 = vcombine.low %v2801_v14, %v3966_v27  ;;  %v1741_v62 = vshll.u32 %v3981_v44, 16 }
  0xad   : > { %1016 = vrot.lane.b32.xlu1 %v2916_v41, %s3292_s23  ;;  %v3945_v41 = vcombine.low %v2815_v58, %v3932_v43  ;;  %v1141_v58 = vsel %vm556_vm1, %v1136_v12, %v1140_v7  ;;  %v1356_v34 = vsel %vm829_vm0, %v1354_v2, %v1355_v11  ;;  %v1358_v12 = vrot.slane %v3916_v63, 1  ;;  %v4001_v63 = vld [vmem:[%s3349_s22 + $0x50] ss:$0 sps:$4 sm:$0x11]  }
  0xae   : > { %1000 = vrot.lane.b32.xlu0 %v2908_v47, %s3292_s23  ;;  %v2799_v47 = vld [vmem:[%s3349_s22 + $0x48] sm:$0xf]  ;;  %v1380_v9 = vsel %vm829_vm0, %v1378_v26, %v1379_v20  ;;  %v1734_v20 = vshll.u32 %v3976_v40, 16  ;;  %v4009_v2 = vld [vmem:[%s3349_s22 + $0xbc] ss:$0 sps:$4 sm:$0x11]   ;;  %v1936_v11 = vsel %vm1934_vm3, %v3386_v23, %v3847_v36 }
  0xaf   : > { %v3941_v60 = vpop.permute.xlu1 %1408  ;;  %v1729_v42 = vshll.u32 %v3945_v41, 16  ;;  %v3973_v48 = vcombine.low %v2799_v47, %v3951_v39 }
  0xb0   : > { %v3947_v33 = vpop.permute.xlu0 %1392  ;;  %v1736_v1 = vrot.slane %v1734_v20, 1 }
  0xb1   : > { %1286 = vrot.lane.b32.xlu1 %v1225_v55, %s3295_s26  ;;  %v1381_v55 = vrot.slane %v2948_v17, 1  ;;  %v1633_v47 = vshll.u32 %v3973_v48, 16  ;;  %v1727_v17 = vshrl.u32 %v3945_v41, 16  ;;  %v1731_v26 = vrot.slane %v1729_v42, 1 }
  0xb2   : > { %1270 = vrot.lane.b32.xlu0 %v1129_v3, %s3295_s26  ;;  %v1357_v3 = vrot.slane %v2940_v35, 1  ;;  %v1952_v35 = vsel %vm1934_vm3, %v3381_v18, %v3868_v8  ;;  %v2851_v18 = vld [vmem:[%s3349_s22 + $0xa8] sm:$0xe]  ;;  %v4019_v8 = vld [vmem:[%s3349_s22 + $0x5c] ss:$0 sps:$4 sm:$0x11]  }
  0xb3   : > { %v3968_v15 = vpop.permute.xlu1 %1518  ;;  %v1383_v14 = vsel %vm829_vm0, %v1381_v55, %v1382_v4  ;;  %v1732_v49 = vor.u32 %v1731_v26, %v1727_v17  ;;  %v1631_v21 = vshrl.u32 %v3973_v48, 16  ;;  %v1635_v57 = vrot.slane %v1633_v47, 1 }
  0xb4   : > { %v3978_v53 = vpop.permute.xlu0 %1502  ;;  %v1985_v23 = vsel %vm1967_vm4, %v1952_v35, %v3804_v6  ;;  %v1739_v55 = vshrl.u32 %v3981_v44, 16  ;;  %v1743_v4 = vrot.slane %v1741_v62, 1  ;;  %v1643_v47 = vshrl.u32 %v3986_v56, 16 }
  0xb5   : > { %1288 = vrot.lane.b32.xlu1 %v1237_v25, %s3295_s26  ;;  %v1645_v25 = vshll.u32 %v3986_v56, 16  ;;  %v2995_v6 = vcombine.low %v2851_v18, %v3932_v43  ;;  %v1650_v20 = vshll.u32 %v4019_v8, 16  ;;  %v1737_v35 = vsel %vm556_vm1, %v1732_v49, %v1736_v1 }
  0xb6   : > { %1272 = vrot.lane.b32.xlu0 %v1141_v58, %s3295_s26  ;;  %v1359_v58 = vsel %vm829_vm0, %v1357_v3, %v1358_v12  ;;  %v1969_v3 = vsel %vm1967_vm4, %v1936_v11, %v3815_v22  ;;  %v1746_v12 = vshll.u32 %v4009_v2, 16  ;;  %v2018_v22 = vsel %vm2000_vm5, %v1985_v23, %v3774_v5  ;;  %v256_v11 = vld [vmem:[%s3349_s22 + $0xa8] sm:$0xf]  ;;  %v4053_v23 = vld [vmem:[%s3349_s22 + $0x4c] sm:$0xf] }
  0xb7   : > { %v3992_v7 = vpop.permute.xlu1 %1520  ;;  %v1647_v17 = vrot.slane %v1645_v25, 1  ;;  %v1636_v25 = vor.u32 %v1635_v57, %v1631_v21  ;;  %v2051_v43 = vsel %vm2033_vm6, %v2018_v22, %v3900_v45  ;;  %v240_v5 = vld [vmem:[%s3349_s22 + $0x48] sm:$0xf]  ;;  %v258_v22 = vld [vmem:[%s3349_s22 + $0xb4] sm:$0xf] }
  0xb8   : > { %v3997_v61 = vpop.permute.xlu0 %1504  ;;  %v2084_v57 = vsel %vm2066_vm7, %v2051_v43, %v3925_v30  ;;  %v1748_v21 = vrot.slane %v1746_v12, 1  ;;  %v1954_v30 = vsel %vm1934_vm3, %v3393_v31, %v3859_v16  ;;  %v1890_v31 = vrot.slane %v2995_v6, 1  ;;  %v4085_v16 = vld [vmem:[%s3349_s22 + $0xb0] ss:$0 sps:$4 sm:$0x11]  }
  0xb9   : > { %1414 = vrot.lane.b32.xlu1 %v1380_v9, %s3296_s27  ;;  %v2843_v9 = vld [vmem:[%s3349_s22 + $0x48] sm:$0xe]  ;;  %v1648_v49 = vor.u32 %v1647_v17, %v1643_v47  ;;  %v2117_v45 = vsel %vm2099_vm8, %v2084_v57, %v3968_v15  ;;  %v4077_v15 = vcombine.low %v240_v5, %v4053_v23  ;;  %v1987_v47 = vsel %vm1967_vm4, %v1954_v30, %v3823_v24 }
  0xba   : > { %1398 = vrot.lane.b32.xlu0 %v1356_v34, %s3296_s27  ;;  %v1638_v34 = vshll.u32 %v4001_v63, 16  ;;  %v2987_v26 = vcombine.low %v2843_v9, %v3951_v39  ;;  %v2002_v39 = vsel %vm2000_vm5, %v1969_v3, %v3788_v50  ;;  %v1744_v9 = vor.u32 %v1743_v4, %v1739_v55 }
  0xbb   : > { %v1791_v42 = vpop.permute.xlu1 %1790  ;;  %v2035_v1 = vsel %vm2033_vm6, %v2002_v39, %v3904_v46  ;;  %v1867_v17 = vrot.slane %v4001_v63, 1  ;;  %v733_v43 = vshll.u32 %v4085_v16, 16  ;;  %v242_v39 = vld [vmem:[%s3349_s22 + $0x54] sm:$0xf] }
  0xbc   : > { %v1775_v36 = vpop.permute.xlu0 %1774  ;;  %v1640_v18 = vrot.slane %v1638_v34, 1  ;;  %v2068_v50 = vsel %vm2066_vm7, %v2035_v1, %v3928_v19  ;;  %v1652_v34 = vrot.slane %v1650_v20, 1  ;;  %v2150_v19 = vsel %vm2132_vm9, %v2117_v45, %v1791_v42 }
  0xbd   : > { %1416 = vrot.lane.b32.xlu1 %v1383_v14, %s3296_s27  ;;  %v4043_v14 = vld [vmem:[%s3349_s22 + $0xac] sm:$0xf]  ;;  %v632_v20 = vshll.u32 %v4077_v15, 16 }
  0xbe   : > { %1400 = vrot.lane.b32.xlu0 %v1359_v58, %s3296_s27  ;;  %v4068_v46 = vcombine.low %v256_v11, %v4043_v14  ;;  %v1641_v42 = vsel %vm556_vm1, %v1636_v25, %v1640_v18  ;;  %v4114_v25 = vld [vmem:[%s3349_s22 + $0xb8] sm:$0xf] }
  0xbf   : > { %v4038_v62 = vpop.permute.xlu1 %1792  ;;  %v4126_v18 = vld [vmem:[%s3349_s22 + $0x58] sm:$0xf] }
  0xc0   : > { %v4049_v58 = vpop.permute.xlu0 %1776  ;;  %v728_v6 = vshll.u32 %v4068_v46, 16 }
  0xc1   : > { %1526 = vrot.lane.b32.xlu1 %v3945_v41, %s3297_s30  ;;  %v2101_v41 = vsel %vm2099_vm8, %v2068_v50, %v3978_v53  ;;  %v4143_v50 = vcombine.low %v258_v22, %v4114_v25 }
  0xc2   : > { %1510 = vrot.lane.b32.xlu0 %v3973_v48, %s3297_s30  ;;  %v1938_v48 = vsel %vm1934_vm3, %v3399_v38, %v3842_v52  ;;  %v2134_v4 = vsel %vm2132_vm9, %v2101_v41, %v1775_v36  ;;  %v1891_v38 = vrot.slane %v3976_v40, 1  ;;  %v1866_v52 = vrot.slane %v2987_v26, 1  ;;  %v4094_v36 = vld [vmem:[%s3349_s22 + $0x50] ss:$0 sps:$4 sm:$0x11]  }
  0xc3   : > { %v1919_v55 = vpop.permute.xlu1 %1918  ;;  %v2020_v40 = vsel %vm2000_vm5, %v1987_v47, %v3880_v29  ;;  %v1971_v26 = vsel %vm1967_vm4, %v1938_v48, %v3835_v59  ;;  %v726_v59 = vshrl.u32 %v4068_v46, 16  ;;  %v735_v48 = vrot.slane %v733_v43, 1  ;;  %v282_v43 = vld [vmem:[%s3349_s22 + $0x48] sm:$0xe] }
  0xc4   : > { %v1903_v3 = vpop.permute.xlu0 %1902  ;;  %v2183_v12 = vsel %vm2165_vm10, %v2150_v19, %v1919_v55  ;;  %v2004_v63 = vsel %vm2000_vm5, %v1971_v26, %v3884_v37  ;;  %v2053_v29 = vsel %vm2033_vm6, %v2020_v40, %v3912_v0  ;;  %v630_v37 = vshrl.u32 %v4077_v15, 16 }
  0xc5   : > { %1528 = vrot.lane.b32.xlu1 %v3981_v44, %s3297_s30  ;;  %v2167_v53 = vsel %vm2165_vm10, %v2134_v4, %v1903_v3  ;;  %3064 = vmatprep.mubr.msk.bf16.mxu1 %vm2218_vm11, %v2183_v12  ;;  %v1749_v44 = vsel %vm556_vm1, %v1744_v9, %v1748_v21  ;;  %v2037_v9 = vsel %vm2033_vm6, %v2004_v63, %v3918_v13  ;;  %v637_v0 = vshll.u32 %v4094_v36, 16  ;;  %v2852_v21 = vld [vmem:[%s3349_s22 + $0xb4] sm:$0xe]  ;;  %v4164_v4 = vld [vmem:[%s3349_s22 + $0xbc] ss:$0 sps:$4 sm:$0x11]  }
  0xc6   : > { %1512 = vrot.lane.b32.xlu0 %v3986_v56, %s3297_s30  ;;  %3048 = vmatprep.mubr.msk.bf16.mxu0 %vm2218_vm11, %v2167_v53  ;;  %v1653_v56 = vsel %vm556_vm1, %v1648_v49, %v1652_v34  ;;  %v2086_v5 = vsel %vm2066_vm7, %v2053_v29, %v3941_v60  ;;  %v2070_v1 = vsel %vm2066_vm7, %v2037_v9, %v3947_v33  ;;  %v2844_v49 = vld [vmem:[%s3349_s22 + $0x54] sm:$0xe]  ;;  %v730_v13 = vrot.slane %v728_v6, 1 }
  0xc7   : > { %v4108_v24 = vpop.permute.xlu1 %769  ;;  %v2119_v57 = vsel %vm2099_vm8, %v2086_v5, %v3992_v7  ;;  %v2103_v60 = vsel %vm2099_vm8, %v2070_v1, %v3997_v61  ;;  %v634_v33 = vrot.slane %v632_v20, 1  ;;  %v4150_v34 = vcombine.low %v242_v39, %v4126_v18 }
  0xc8   : > { %v4120_v11 = vpop.permute.xlu0 %753  ;;  %v2136_v7 = vsel %vm2132_vm9, %v2103_v60, %v4049_v58  ;;  %v2996_v19 = vcombine.low %v2852_v21, %v3958_v10  ;;  %v2988_v61 = vcombine.low %v2844_v49, %v3966_v27  ;;  %v731_v58 = vor.u32 %v730_v13, %v726_v59  ;;  %v291_v13 = vld [vmem:[%s3349_s22 + $0xb4] sm:$0xe] }
  0xc9   : > { %1798 = vrot.lane.b32.xlu1 %v1737_v35, %s3298_s7  ;;  %v2152_v35 = vsel %vm2132_vm9, %v2119_v57, %v4038_v62  ;;  %v1892_v62 = vsel %vm829_vm0, %v1890_v31, %v1891_v38  ;;  %v740_v10 = vshll.u32 %v4143_v50, 16  ;;  %v1868_v27 = vsel %vm829_vm0, %v1866_v52, %v1867_v17 }
  0xca   : > { %1782 = vrot.lane.b32.xlu0 %v1641_v42, %s3298_s7  ;;  %v635_v12 = vor.u32 %v634_v33, %v630_v37  ;;  %v639_v53 = vrot.slane %v637_v0, 1  ;;  %v4171_v42 = vld [vmem:[%s3349_s22 + $0x5c] ss:$0 sps:$4 sm:$0x11]   ;;  %v644_v47 = vshll.u32 %v4150_v34, 16  ;;  %v1893_v31 = vrot.slane %v2996_v19, 1 }
  0xcb   : > { %v1921_v45 = vpop.permute.xlu1 %1920  ;;  %v1894_v38 = vrot.slane %v4009_v2, 1  ;;  %v1869_v6 = vrot.slane %v2988_v61, 1  ;;  %v1870_v40 = vrot.slane %v4019_v8, 1  ;;  %v736_v52 = vsel %vm556_vm1, %v731_v58, %v735_v48  ;;  %v290_v8 = vld [vmem:[%s3349_s22 + $0xa8] sm:$0xe] }
  0xcc   : > { %v2185_v30 = vsel %vm2165_vm10, %v2152_v35, %v1921_v45  ;;  %v1905_v41 = vpop.permute.xlu0 %1904  ;;  %v738_v17 = vshrl.u32 %v4143_v50, 16  ;;  %v742_v26 = vrot.slane %v740_v10, 1  ;;  %v640_v22 = vsel %vm556_vm1, %v635_v12, %v639_v53  ;;  %v283_v35 = vld [vmem:[%s3349_s22 + $0x54] sm:$0xe] }
  0xcd   : > { %v2169_v55 = vsel %vm2165_vm10, %v2136_v7, %v1905_v41  ;;  %1800 = vrot.lane.b32.xlu1 %v1749_v44, %s3298_s7  ;;  %3065 = vmatmul.mubr.msk.bf16.vlgmr.msra.gmra.mrb[0].mxu1 %vm2218_vm11, %v2185_v30  ;;  %v642_v63 = vshrl.u32 %v4150_v34, 16  ;;  %v646_v29 = vrot.slane %v644_v47, 1  ;;  %v649_v2 = vshll.u32 %v4171_v42, 16  ;;  %v2739_v48 = vld [vmem:[%s3349_s22 + $0x54] sm:$0xf] }
  0xce   : > { %1784 = vrot.lane.b32.xlu0 %v1653_v56, %s3298_s7  ;;  %3049 = vmatmul.mubr.msk.bf16.vlgmr.msra.gmra.mrb[0].mxu0 %vm2218_vm11, %v2169_v55  ;;  %v745_v56 = vshll.u32 %v4164_v4, 16  ;;  %v1895_v39 = vsel %vm829_vm0, %v1893_v31, %v1894_v38  ;;  %v743_v9 = vor.u32 %v742_v26, %v738_v17  ;;  %v2901_v37 = vcombine.low %v290_v8, %v4043_v14  ;;  %v2755_v55 = vld [vmem:[%s3349_s22 + $0xb4] sm:$0xf]  ;;  %v2757_v38 = vld [vmem:[%s3349_s22 + $0xc0] sm:$0xf] }
  0xcf   : > { %v4167_v3 = vpop.permute.xlu1 %771  ;;  %v1871_v1 = vsel %vm829_vm0, %v1869_v6, %v1870_v40  ;;  %v647_v57 = vor.u32 %v646_v29, %v642_v63  ;;  %v651_v21 = vrot.slane %v649_v2, 1  ;;  %v2893_v49 = vcombine.low %v282_v43, %v4053_v23  ;;  %v4236_v6 = vld [vmem:[%s3349_s22 + $0xc4] sm:$0xf] }
  0xd0   : > { %v4174_v44 = vpop.permute.xlu0 %755  ;;  %v747_v5 = vrot.slane %v745_v56, 1  ;;  %v872_v45 = vrot.slane %v2901_v37, 1  ;;  %v873_v33 = vrot.slane %v4085_v16, 1  ;;  %v2902_v7 = vcombine.low %v291_v13, %v4114_v25  ;;  %v4222_v16 = vld [vmem:[%s3349_s22 + $0x58] sm:$0xf] }
  0xd1   : > { %1926 = vrot.lane.b32.xlu1 %v1892_v62, %s3299_s8  ;;  %v652_v23 = vsel %vm556_vm1, %v647_v57, %v651_v21  ;;  %v848_v41 = vrot.slane %v2893_v49, 1  ;;  %v849_v19 = vrot.slane %v4094_v36, 1  ;;  %v2894_v61 = vcombine.low %v283_v35, %v4126_v18  ;;  %v4216_v62 = vld [vmem:[%s3349_s22 + $0xb8] sm:$0xf]  ;;  %v4242_v17 = vld [vmem:[%s3349_s22 + $0x64] sm:$0xf] }
  0xd2   : > { %1910 = vrot.lane.b32.xlu0 %v1868_v27, %s3299_s8  ;;  %v748_v14 = vsel %vm556_vm1, %v743_v9, %v747_v5  ;;  %v874_v36 = vsel %vm829_vm0, %v872_v45, %v873_v33  ;;  %v875_v25 = vrot.slane %v2902_v7, 1  ;;  %v876_v18 = vrot.slane %v4164_v4, 1  ;;  %v4246_v4 = vld [vmem:[%s3349_s22 + $0xbc] ss:$0 sps:$4 sm:$0x11]  }
  0xd3   : > { %v4183_v20 = vpop.permute.xlu1 %898  ;;  %v2917_v10 = vcombine.low %v2755_v55, %v4216_v62  ;;  %v850_v12 = vsel %vm829_vm0, %v848_v41, %v849_v19  ;;  %v851_v53 = vrot.slane %v2894_v61, 1  ;;  %v852_v47 = vrot.slane %v4171_v42, 1  ;;  %v4270_v35 = vld [vmem:[%s3349_s22 + $0x68] ss:$0 sps:$4 sm:$0x11]  }
  0xd4   : > { %v4189_v59 = vpop.permute.xlu0 %882  ;;  %v2909_v31 = vcombine.low %v2739_v48, %v4222_v16  ;;  %v877_v26 = vsel %vm829_vm0, %v875_v25, %v876_v18  ;;  %v2918_v42 = vcombine.low %v2757_v38, %v4236_v6  ;;  %v1246_v9 = vshll.u32 %v4246_v4, 16 }
  0xd5   : > { %777 = vrot.lane.b32.xlu1 %v736_v52, %s3294_s25  ;;  %v2741_v52 = vld [vmem:[%s3349_s22 + $0x60] sm:$0xf]  ;;  %v1241_v56 = vshll.u32 %v2917_v10, 16  ;;  %v853_v29 = vsel %vm829_vm0, %v851_v53, %v852_v47  ;;  %v1162_v18 = vshll.u32 %v4270_v35, 16  ;;  %v2781_v53 = vld [vmem:[%s3349_s22 + $0x54] sm:$0xe] }
  0xd6   : > { %761 = vrot.lane.b32.xlu0 %v640_v22, %s3294_s25  ;;  %v4252_v22 = vld [vmem:[%s3349_s22 + $0x5c] ss:$0 sps:$4 sm:$0x11]   ;;  %v2910_v2 = vcombine.low %v2741_v52, %v4242_v17  ;;  %v1145_v8 = vshll.u32 %v2909_v31, 16  ;;  %v1253_v57 = vshll.u32 %v2918_v42, 16  ;;  %v1143_v49 = vshrl.u32 %v2909_v31, 16 }
  0xd7   : > { %v4196_v0 = vpop.permute.xlu1 %900  ;;  %v1243_v5 = vrot.slane %v1241_v56, 1  ;;  %v1150_v37 = vshll.u32 %v4252_v22, 16  ;;  %v1248_v33 = vrot.slane %v1246_v9, 1  ;;  %v1251_v7 = vshrl.u32 %v2918_v42, 16  ;;  %v2790_v9 = vld [vmem:[%s3349_s22 + $0xc0] sm:$0xe] }
  0xd8   : > { %v4201_v60 = vpop.permute.xlu0 %884  ;;  %v1147_v13 = vrot.slane %v1145_v8, 1  ;;  %v1255_v19 = vrot.slane %v1253_v57, 1  ;;  %v1164_v8 = vrot.slane %v1162_v18, 1 }
  0xd9   : > { %1928 = vrot.lane.b32.xlu1 %v1895_v39, %s3299_s8  ;;  %v1239_v39 = vshrl.u32 %v2917_v10, 16  ;;  %v1152_v41 = vrot.slane %v1150_v37, 1  ;;  %v4298_v37 = vld [vmem:[%s3349_s22 + $0xc4] sm:$0xf] }
  0xda   : > { %1912 = vrot.lane.b32.xlu0 %v1871_v1, %s3299_s8  ;;  %v4265_v1 = vld [vmem:[%s3349_s22 + $0xc8] ss:$0 sps:$4 sm:$0x11]   ;;  %v1148_v48 = vor.u32 %v1147_v13, %v1143_v49  ;;  %v2950_v13 = vcombine.low %v2790_v9, %v4236_v6 }
  0xdb   : > { %v4209_v30 = vpop.permute.xlu1 %1010  ;;  %v1258_v61 = vshll.u32 %v4265_v1, 16  ;;  %v1388_v18 = vrot.slane %v4265_v1, 1 }
  0xdc   : > { %v4218_v58 = vpop.permute.xlu0 %994  ;;  %v1153_v56 = vsel %vm556_vm1, %v1148_v48, %v1152_v41  ;;  %v2821_v48 = vld [vmem:[%s3349_s22 + $0xcc] sm:$0xf] }
  0xdd   : > { %779 = vrot.lane.b32.xlu1 %v748_v14, %s3294_s25  ;;  %v1157_v14 = vshll.u32 %v2910_v2, 16  ;;  %v1260_v38 = vrot.slane %v1258_v61, 1 }
  0xde   : > { %763 = vrot.lane.b32.xlu0 %v652_v23, %s3294_s25  ;;  %v1244_v23 = vor.u32 %v1243_v5, %v1239_v39  ;;  %v2941_v39 = vcombine.low %v2781_v53, %v4222_v16  ;;  %v2819_v5 = vld [vmem:[%s3349_s22 + $0xc0] sm:$0xf]  ;;  %v1361_v16 = vrot.slane %v4252_v22, 1  ;;  %v4321_v22 = vld [vmem:[%s3349_s22 + $0xd0] sm:$0xf] }
  0xdf   : > { %v4229_v27 = vpop.permute.xlu1 %1012  ;;  %v1159_v25 = vrot.slane %v1157_v14, 1  ;;  %v2803_v14 = vld [vmem:[%s3349_s22 + $0x60] sm:$0xf] }
  0xe0   : > { %v4238_v40 = vpop.permute.xlu0 %996  ;;  %v1249_v47 = vsel %vm556_vm1, %v1244_v23, %v1248_v33  ;;  %v4308_v33 = vld [vmem:[%s3349_s22 + $0x64] sm:$0xf]  ;;  %v1360_v41 = vrot.slane %v2941_v39, 1  ;;  %v4343_v39 = vld [vmem:[%s3349_s22 + $0x68] ss:$0 sps:$4 sm:$0x11]  }
  0xe1   : > { %906 = vrot.lane.b32.xlu1 %v874_v36, %s3293_s24  ;;  %v1155_v36 = vshrl.u32 %v2910_v2, 16  ;;  %v2957_v6 = vcombine.low %v2803_v14, %v4308_v33  ;;  %v1662_v14 = vshll.u32 %v4343_v39, 16 }
  0xe2   : > { %890 = vrot.lane.b32.xlu0 %v850_v12, %s3293_s24  ;;  %v2789_v12 = vld [vmem:[%s3349_s22 + $0xb4] sm:$0xe]  ;;  %v1362_v53 = vsel %vm829_vm0, %v1360_v41, %v1361_v16  ;;  %v1956_v41 = vsel %vm1934_vm3, %v3537_v51, %v4108_v24 }
  0xe3   : > { %v4254_v63 = vpop.permute.xlu1 %1282  ;;  %v2949_v52 = vcombine.low %v2789_v12, %v4216_v62  ;;  %v1385_v62 = vrot.slane %v4246_v4, 1  ;;  %v1657_v9 = vshll.u32 %v2957_v6, 16 }
  0xe4   : > { %v4258_v43 = vpop.permute.xlu0 %1266 }
  0xe5   : > { %908 = vrot.lane.b32.xlu1 %v877_v26, %s3293_s24  ;;  %v1384_v49 = vrot.slane %v2949_v52, 1 }
  0xe6   : > { %892 = vrot.lane.b32.xlu0 %v853_v29, %s3293_s24  ;;  %v1160_v29 = vor.u32 %v1159_v25, %v1155_v36  ;;  %v4324_v36 = vld [vmem:[%s3349_s22 + $0xc8] ss:$0 sps:$4 sm:$0x11]   ;;  %v1387_v25 = vrot.slane %v2950_v13, 1 }
  0xe7   : > { %v4267_v21 = vpop.permute.xlu1 %1284  ;;  %v1758_v1 = vshll.u32 %v4324_v36, 16 }
  0xe8   : > { %v4272_v45 = vpop.permute.xlu0 %1268  ;;  %v1165_v23 = vsel %vm556_vm1, %v1160_v29, %v1164_v8  ;;  %v4337_v29 = vcombine.low %v2821_v48, %v4321_v22  ;;  %v4340_v8 = vld [vmem:[%s3349_s22 + $0x70] sm:$0xf]  ;;  %v1655_v48 = vshrl.u32 %v2957_v6, 16 }
  0xe9   : > { %1018 = vrot.lane.b32.xlu1 %v2917_v10, %s3292_s23 }
  0xea   : > { %1002 = vrot.lane.b32.xlu0 %v2909_v31, %s3292_s23  ;;  %v1256_v31 = vor.u32 %v1255_v19, %v1251_v7  ;;  %v2965_v19 = vcombine.low %v2819_v5, %v4298_v37 }
  0xeb   : > { %v4277_v55 = vpop.permute.xlu1 %1410 }
  0xec   : > { %v4281_v10 = vpop.permute.xlu0 %1394  ;;  %v1261_v57 = vsel %vm556_vm1, %v1256_v31, %v1260_v38  ;;  %v1364_v31 = vrot.slane %v4270_v35, 1  ;;  %v2805_v38 = vld [vmem:[%s3349_s22 + $0x6c] sm:$0xf]  ;;  %v1753_v52 = vshll.u32 %v2965_v19, 16  ;;  %v1389_v35 = vsel %vm829_vm0, %v1387_v25, %v1388_v18 }
  0xed   : > { %1020 = vrot.lane.b32.xlu1 %v2918_v42, %s3292_s23  ;;  %v1940_v25 = vsel %vm1934_vm3, %v3540_v54, %v4120_v11  ;;  %v1989_v18 = vsel %vm1967_vm4, %v1956_v41, %v4183_v20 }
  0xee   : > { %1004 = vrot.lane.b32.xlu0 %v2910_v2, %s3292_s23  ;;  %v2782_v2 = vld [vmem:[%s3349_s22 + $0x60] sm:$0xe]  ;;  %v1755_v16 = vrot.slane %v1753_v52, 1  ;;  %v1973_v51 = vsel %vm1967_vm4, %v1940_v25, %v4189_v59  ;;  %v2022_v24 = vsel %vm2000_vm5, %v1989_v18, %v4209_v30 }
  0xef   : > { %v4288_v26 = vpop.permute.xlu1 %1412  ;;  %v2942_v4 = vcombine.low %v2782_v2, %v4242_v17  ;;  %v1386_v17 = vsel %vm829_vm0, %v1384_v49, %v1385_v62  ;;  %v4350_v2 = vld [vmem:[%s3349_s22 + $0xd4] ss:$0 sps:$4 sm:$0x11]   ;;  %v1751_v49 = vshrl.u32 %v2965_v19, 16  ;;  %v2006_v20 = vsel %vm2000_vm5, %v1973_v51, %v4218_v58  ;;  %v2853_v58 = vld [vmem:[%s3349_s22 + $0xc0] sm:$0xe] }
  0xf0   : > { %v4293_v42 = vpop.permute.xlu0 %1396  ;;  %v2055_v52 = vsel %vm2033_vm6, %v2022_v24, %v4254_v63  ;;  %v2039_v59 = vsel %vm2033_vm6, %v2006_v20, %v4258_v43  ;;  %v2846_v24 = vld [vmem:[%s3349_s22 + $0x6c] sm:$0xe] }
  0xf1   : > { %1290 = vrot.lane.b32.xlu1 %v1249_v47, %s3295_s26  ;;  %v1363_v47 = vrot.slane %v2942_v4, 1  ;;  %v1760_v4 = vrot.slane %v1758_v1, 1  ;;  %v1756_v54 = vor.u32 %v1755_v16, %v1751_v49  ;;  %v2088_v30 = vsel %vm2066_vm7, %v2055_v52, %v4277_v55 }
  0xf2   : > { %1274 = vrot.lane.b32.xlu0 %v1153_v56, %s3295_s26  ;;  %v2072_v63 = vsel %vm2066_vm7, %v2039_v59, %v4281_v10 }
  0xf3   : > { %v4310_v7 = vpop.permute.xlu1 %1522  ;;  %v1365_v62 = vsel %vm829_vm0, %v1363_v47, %v1364_v31  ;;  %v1770_v47 = vshll.u32 %v4350_v2, 16  ;;  %v4371_v31 = vld [vmem:[%s3349_s22 + $0x74] ss:$0 sps:$4 sm:$0x11]   ;;  %v1761_v41 = vsel %vm556_vm1, %v1756_v54, %v1760_v4  ;;  %v1942_v4 = vsel %vm1934_vm3, %v3583_v32, %v4174_v44 }
  0xf4   : > { %v4315_v61 = vpop.permute.xlu0 %1506  ;;  %v2121_v16 = vsel %vm2099_vm8, %v2088_v30, %v4310_v7  ;;  %v1674_v43 = vshll.u32 %v4371_v31, 16 }
  0xf5   : > { %1292 = vrot.lane.b32.xlu1 %v1261_v57, %s3295_s26  ;;  %v4354_v57 = vcombine.low %v2805_v38, %v4340_v8  ;;  %v2105_v55 = vsel %vm2099_vm8, %v2072_v63, %v4315_v61  ;;  %v1958_v61 = vsel %vm1934_vm3, %v3578_v28, %v4167_v3  ;;  %v1975_v3 = vsel %vm1967_vm4, %v1942_v4, %v4201_v60 }
  0xf6   : > { %1276 = vrot.lane.b32.xlu0 %v1165_v23, %s3295_s26  ;;  %v1765_v23 = vshll.u32 %v4337_v29, 16  ;;  %v1676_v44 = vrot.slane %v1674_v43, 1  ;;  %v1897_v60 = vrot.slane %v4324_v36, 1 }
  0xf7   : > { %v4329_v12 = vpop.permute.xlu1 %1524  ;;  %v1669_v11 = vshll.u32 %v4354_v57, 16  ;;  %v1667_v49 = vshrl.u32 %v4354_v57, 16 }
  0xf8   : > { %v4334_v56 = vpop.permute.xlu0 %1508 }
  0xf9   : > { %1418 = vrot.lane.b32.xlu1 %v1386_v17, %s3296_s27  ;;  %v1659_v17 = vrot.slane %v1657_v9, 1  ;;  %v1664_v9 = vrot.slane %v1662_v14, 1  ;;  %v1772_v14 = vrot.slane %v1770_v47, 1  ;;  %v2854_v47 = vld [vmem:[%s3349_s22 + $0xcc] sm:$0xe] }
  0xfa   : > { %1402 = vrot.lane.b32.xlu0 %v1362_v53, %s3296_s27  ;;  %v1763_v53 = vshrl.u32 %v4337_v29, 16  ;;  %v2998_v52 = vcombine.low %v2854_v47, %v4321_v22 }
  0xfb   : > { %v1795_v5 = vpop.permute.xlu1 %1794 }
  0xfc   : > { %v1779_v13 = vpop.permute.xlu0 %1778 }
  0xfd   : > { %1420 = vrot.lane.b32.xlu1 %v1389_v35, %s3296_s27  ;;  %v1767_v35 = vrot.slane %v1765_v23, 1  ;;  %v2138_v10 = vsel %vm2132_vm9, %v2105_v55, %v1779_v13 }
  0xfe   : > { %1404 = vrot.lane.b32.xlu0 %v1365_v62, %s3296_s27  ;;  %v1660_v62 = vor.u32 %v1659_v17, %v1655_v48  ;;  %v1671_v48 = vrot.slane %v1669_v11, 1  ;;  %v2845_v17 = vld [vmem:[%s3349_s22 + $0x60] sm:$0xe] }
  0xff   : > { %v4377_v38 = vpop.permute.xlu1 %1796  ;;  %v1768_v18 = vor.u32 %v1767_v35, %v1763_v53  ;;  %v2989_v28 = vcombine.low %v2845_v17, %v4308_v33  ;;  %v2990_v35 = vcombine.low %v2846_v24, %v4340_v8  ;;  %v1900_v8 = vrot.slane %v4350_v2, 1 }
 0x100   : > { %v4384_v1 = vpop.permute.xlu0 %1780  ;;  %v1665_v13 = vsel %vm556_vm1, %v1660_v62, %v1664_v9  ;;  %v1672_v32 = vor.u32 %v1671_v48, %v1667_v49  ;;  %v1876_v49 = vrot.slane %v4371_v31, 1 }
 0x101   : > { %1530 = vrot.lane.b32.xlu1 %v2965_v19, %s3297_s30  ;;  %v2154_v19 = vsel %vm2132_vm9, %v2121_v16, %v1795_v5  ;;  %v1773_v33 = vsel %vm556_vm1, %v1768_v18, %v1772_v14  ;;  %v1872_v36 = vrot.slane %v2989_v28, 1  ;;  %v1875_v62 = vrot.slane %v2990_v35, 1 }
 0x102   : > { %1514 = vrot.lane.b32.xlu0 %v2957_v6, %s3297_s30  ;;  %v2997_v6 = vcombine.low %v2853_v58, %v4298_v37  ;;  %v1991_v37 = vsel %vm1967_vm4, %v1958_v61, %v4196_v0  ;;  %v2008_v0 = vsel %vm2000_vm5, %v1975_v3, %v4238_v40  ;;  %v1873_v40 = vrot.slane %v4343_v39, 1 }
 0x103   : > { %v1923_v23 = vpop.permute.xlu1 %1922  ;;  %v1677_v39 = vsel %vm556_vm1, %v1672_v32, %v1676_v44  ;;  %v1877_v14 = vsel %vm829_vm0, %v1875_v62, %v1876_v49  ;;  %v4725_v44 = vld [vmem:[#allocation3_spill] sm:$0xff] }
 0x104   : > { %v2187_v25 = vsel %vm2165_vm10, %v2154_v19, %v1923_v23  ;;  %v1907_v7 = vpop.permute.xlu0 %1906  ;;  %v1896_v11 = vrot.slane %v2997_v6, 1 }
 0x105   : > { %v2171_v5 = vsel %vm2165_vm10, %v2138_v10, %v1907_v7  ;;  %1532 = vrot.lane.b32.xlu1 %v4337_v29, %s3297_s30  ;;  %3068 = vmatprep.mubr.msk.bf16.mxu1 %vm2218_vm11, %v2187_v25  ;;  %v2024_v29 = vsel %vm2000_vm5, %v1991_v37, %v4229_v27  ;;  %v2041_v27 = vsel %vm2033_vm6, %v2008_v0, %v4272_v45 }
 0x106   : > { %1516 = vrot.lane.b32.xlu0 %v4354_v57, %s3297_s30  ;;  %3052 = vmatprep.mubr.msk.bf16.mxu0 %vm2218_vm11, %v2171_v5  ;;  %v2057_v57 = vsel %vm2033_vm6, %v2024_v29, %v4267_v21  ;;  %v2074_v21 = vsel %vm2066_vm7, %v2041_v27, %v4293_v42  ;;  %v1898_v22 = vsel %vm829_vm0, %v1896_v11, %v1897_v60  ;;  %v4724_v29 = vld [vmem:[#allocation2_spill] sm:$0xff] }
 0x107   : > { %v4428_v53 = vpop.permute.xlu1 %773  ;;  %v2090_v54 = vsel %vm2066_vm7, %v2057_v57, %v4288_v26  ;;  %v2107_v45 = vsel %vm2099_vm8, %v2074_v21, %v4334_v56  ;;  %v1899_v56 = vrot.slane %v2998_v52, 1 }
 0x108   : > { %v4435_v51 = vpop.permute.xlu0 %757  ;;  %v2123_v20 = vsel %vm2099_vm8, %v2090_v54, %v4329_v12  ;;  %v2140_v42 = vsel %vm2132_vm9, %v2107_v45, %v4384_v1  ;;  %v1874_v1 = vsel %vm829_vm0, %v1872_v36, %v1873_v40  ;;  %v1960_v32 = vsel %vm1934_vm3, %v4724_v29, %v4428_v53 }
 0x109   : > { %1802 = vrot.lane.b32.xlu1 %v1761_v41, %s3298_s7  ;;  %v2156_v26 = vsel %vm2132_vm9, %v2123_v20, %v4377_v38  ;;  %v1901_v63 = vsel %vm829_vm0, %v1899_v56, %v1900_v8  ;;  %v1944_v47 = vsel %vm1934_vm3, %v4725_v44, %v4435_v51 }
 0x10a   : > { %1786 = vrot.lane.b32.xlu0 %v1665_v13, %s3298_s7 }
 0x10b   : > { %v1925_v9 = vpop.permute.xlu1 %1924 }
 0x10c   : > { %v2189_v12 = vsel %vm2165_vm10, %v2156_v26, %v1925_v9  ;;  %v1909_v59 = vpop.permute.xlu0 %1908  ;;  %v4726_v9 = vld [vmem:[#allocation4_spill] sm:$0xff] }
 0x10d   : > { %v2173_v30 = vsel %vm2165_vm10, %v2140_v42, %v1909_v59  ;;  %1804 = vrot.lane.b32.xlu1 %v1773_v33, %s3298_s7  ;;  %3069 = vmatmul.mubr.msk.bf16.gmra.mrb[4].mxu1 %vm2218_vm11, %v2189_v12  ;;  %v4727_v42 = vld [vmem:[#allocation5_spill] sm:$0xff] }
 0x10e   : > { %1788 = vrot.lane.b32.xlu0 %v1677_v39, %s3298_s7  ;;  %3053 = vmatmul.mubr.msk.bf16.gmra.mrb[4].mxu0 %vm2218_vm11, %v2173_v30 }
 0x10f   : > { %v776_v38 = vpop.permute.xlu1 %775 }
 0x110   : > { %v760_v58 = vpop.permute.xlu0 %759  ;;  %v1962_v39 = vsel %vm1934_vm3, %v4726_v9, %v776_v38 }
 0x111   : > { %1930 = vrot.lane.b32.xlu1 %v1898_v22, %s3299_s8  ;;  %v1946_v12 = vsel %vm1934_vm3, %v4727_v42, %v760_v58 }
 0x112   : > { %1914 = vrot.lane.b32.xlu0 %v1874_v1, %s3299_s8 }
 0x113   : > { %v903_v16 = vpop.permute.xlu1 %902 }
 0x114   : > { %v887_v43 = vpop.permute.xlu0 %886  ;;  %v1993_v0 = vsel %vm1967_vm4, %v1960_v32, %v903_v16 }
 0x115   : > { %1932 = vrot.lane.b32.xlu1 %v1901_v63, %s3299_s8  ;;  %v1977_v57 = vsel %vm1967_vm4, %v1944_v47, %v887_v43 }
 0x116   : > { %1916 = vrot.lane.b32.xlu0 %v1877_v14, %s3299_s8 }
 0x117   : > { %v905_v2 = vpop.permute.xlu1 %904 }
 0x118   : > { %v889_v55 = vpop.permute.xlu0 %888  ;;  %v1995_v59 = vsel %vm1967_vm4, %v1962_v39, %v905_v2 }
 0x119   : > { %v1979_v30 = vsel %vm1967_vm4, %v1946_v12, %v889_v55 }
 0x11b   : > { %v1015_v19 = vpop.permute.xlu1 %1014 }
 0x11c   : > { %v999_v23 = vpop.permute.xlu0 %998  ;;  %v2026_v33 = vsel %vm2000_vm5, %v1993_v0, %v1015_v19 }
 0x11d   : > { %v2010_v24 = vsel %vm2000_vm5, %v1977_v57, %v999_v23 }
 0x11f   : > { %v1017_v31 = vpop.permute.xlu1 %1016 }
 0x120   : > { %v1001_v41 = vpop.permute.xlu0 %1000  ;;  %v2028_v22 = vsel %vm2000_vm5, %v1995_v59, %v1017_v31 }
 0x121   : > { %v2012_v8 = vsel %vm2000_vm5, %v1979_v30, %v1001_v41 }
 0x123   : > { %v1287_v48 = vpop.permute.xlu1 %1286 }
 0x124   : > { %v1271_v17 = vpop.permute.xlu0 %1270  ;;  %v2059_v27 = vsel %vm2033_vm6, %v2026_v33, %v1287_v48 }
 0x125   : > { %v2043_v11 = vsel %vm2033_vm6, %v2010_v24, %v1271_v17 }
 0x127   : > { %v1289_v10 = vpop.permute.xlu1 %1288 }
 0x128   : > { %v1273_v25 = vpop.permute.xlu0 %1272  ;;  %v2061_v38 = vsel %vm2033_vm6, %v2028_v22, %v1289_v10 }
 0x129   : > { %v2045_v62 = vsel %vm2033_vm6, %v2012_v8, %v1273_v25 }
 0x12b   : > { %v1415_v7 = vpop.permute.xlu1 %1414 }
 0x12c   : > { %v1399_v18 = vpop.permute.xlu0 %1398  ;;  %v2092_v53 = vsel %vm2066_vm7, %v2059_v27, %v1415_v7 }
 0x12d   : > { %v2076_v40 = vsel %vm2066_vm7, %v2043_v11, %v1399_v18 }
 0x12f   : > { %v1417_v6 = vpop.permute.xlu1 %1416 }
 0x130   : > { %v1401_v61 = vpop.permute.xlu0 %1400  ;;  %v2094_v49 = vsel %vm2066_vm7, %v2061_v38, %v1417_v6 }
 0x131   : > { %v2078_v58 = vsel %vm2066_vm7, %v2045_v62, %v1401_v61 }
 0x133   : > { %v1527_v5 = vpop.permute.xlu1 %1526 }
 0x134   : > { %v1511_v13 = vpop.permute.xlu0 %1510  ;;  %v2125_v51 = vsel %vm2099_vm8, %v2092_v53, %v1527_v5 }
 0x135   : > { %v2109_v21 = vsel %vm2099_vm8, %v2076_v40, %v1511_v13 }
 0x137   : > { %v1529_v4 = vpop.permute.xlu1 %1528 }
 0x138   : > { %v1513_v37 = vpop.permute.xlu0 %1512  ;;  %v2127_v63 = vsel %vm2099_vm8, %v2094_v49, %v1529_v4 }
 0x139   : > { %v2111_v16 = vsel %vm2099_vm8, %v2078_v58, %v1513_v37 }
 0x13b   : > { %v1799_v28 = vpop.permute.xlu1 %1798 }
 0x13c   : > { %v1783_v3 = vpop.permute.xlu0 %1782  ;;  %v2158_v20 = vsel %vm2132_vm9, %v2125_v51, %v1799_v28 }
 0x13d   : > { %v2142_v52 = vsel %vm2132_vm9, %v2109_v21, %v1783_v3 }
 0x13f   : > { %v1801_v60 = vpop.permute.xlu1 %1800 }
 0x140   : > { %v1785_v54 = vpop.permute.xlu0 %1784  ;;  %v2160_v14 = vsel %vm2132_vm9, %v2127_v63, %v1801_v60 }
 0x141   : > { %v2144_v2 = vsel %vm2132_vm9, %v2111_v16, %v1785_v54 }
 0x143   : > { %v1927_v36 = vpop.permute.xlu1 %1926 }
 0x144   : > { %v2191_v45 = vsel %vm2165_vm10, %v2158_v20, %v1927_v36  ;;  %v1911_v26 = vpop.permute.xlu0 %1910 }
 0x145   : > { %v2175_v35 = vsel %vm2165_vm10, %v2142_v52, %v1911_v26  ;;  %3072 = vmatprep.mubr.msk.bf16.mxu1 %vm2218_vm11, %v2191_v45 }
 0x146   : > { %3056 = vmatprep.mubr.msk.bf16.mxu0 %vm2218_vm11, %v2175_v35 }
 0x147   : > { %v778_v56 = vpop.permute.xlu1 %777 }
 0x148   : > { %v762_v1 = vpop.permute.xlu0 %761  ;;  %v1964_v24 = vsel %vm1934_vm3, %v4068_v46, %v778_v56 }
 0x149   : > { %v1948_v27 = vsel %vm1934_vm3, %v4077_v15, %v762_v1 }
 0x14b   : > { %v1929_v43 = vpop.permute.xlu1 %1928 }
 0x14c   : > { %v2193_v55 = vsel %vm2165_vm10, %v2160_v14, %v1929_v43  ;;  %v1913_v19 = vpop.permute.xlu0 %1912 }
 0x14d   : > { %v2177_v23 = vsel %vm2165_vm10, %v2144_v2, %v1913_v19  ;;  %3073 = vmatmul.mubr.msk.bf16.gmra.mrb[8].mxu1 %vm2218_vm11, %v2193_v55  ;;  %v4561_v19 = vld [vmem:[%s4713_s2] ss:$0 sm:$0xff] }
 0x14e   : > { %3057 = vmatmul.mubr.msk.bf16.gmra.mrb[8].mxu0 %vm2218_vm11, %v2177_v23  ;;  %v4566_v23 = vld [vmem:[%s4714_s3] ss:$0 sm:$0xff] }
 0x14f   : > { %v780_v31 = vpop.permute.xlu1 %779 }
 0x150   : > { %v764_v41 = vpop.permute.xlu0 %763  ;;  %v1966_v36 = vsel %vm1934_vm3, %v4143_v50, %v780_v31 }
 0x151   : > { %v1950_v15 = vsel %vm1934_vm3, %v4150_v34, %v764_v41 }
 0x153   : > { %v907_v48 = vpop.permute.xlu1 %906 }
 0x154   : > { %v891_v17 = vpop.permute.xlu0 %890  ;;  %v1997_v54 = vsel %vm1967_vm4, %v1964_v24, %v907_v48 }
 0x155   : > { %v1981_v11 = vsel %vm1967_vm4, %v1948_v27, %v891_v17 }
 0x157   : > { %v909_v10 = vpop.permute.xlu1 %908 }
 0x158   : > { %v893_v25 = vpop.permute.xlu0 %892  ;;  %v1999_v45 = vsel %vm1967_vm4, %v1966_v36, %v909_v10 }
 0x159   : > { %v1983_v39 = vsel %vm1967_vm4, %v1950_v15, %v893_v25 }
 0x15b   : > { %v1019_v7 = vpop.permute.xlu1 %1018 }
 0x15c   : > { %v1003_v18 = vpop.permute.xlu0 %1002  ;;  %v2030_v53 = vsel %vm2000_vm5, %v1997_v54, %v1019_v7 }
 0x15d   : > { %v2014_v51 = vsel %vm2000_vm5, %v1981_v11, %v1003_v18 }
 0x15f   : > { %v1021_v6 = vpop.permute.xlu1 %1020 }
 0x160   : > { %v1005_v61 = vpop.permute.xlu0 %1004  ;;  %v2032_v35 = vsel %vm2000_vm5, %v1999_v45, %v1021_v6 }
 0x161   : > { %v2016_v59 = vsel %vm2000_vm5, %v1983_v39, %v1005_v61 }
 0x163   : > { %v1291_v5 = vpop.permute.xlu1 %1290 }
 0x164   : > { %v1275_v13 = vpop.permute.xlu0 %1274  ;;  %v2063_v21 = vsel %vm2033_vm6, %v2030_v53, %v1291_v5 }
 0x165   : > { %v2047_v46 = vsel %vm2033_vm6, %v2014_v51, %v1275_v13 }
 0x167   : > { %v1293_v4 = vpop.permute.xlu1 %1292 }
 0x168   : > { %v1277_v37 = vpop.permute.xlu0 %1276  ;;  %v2065_v30 = vsel %vm2033_vm6, %v2032_v35, %v1293_v4 }
 0x169   : > { %v2049_v8 = vsel %vm2033_vm6, %v2016_v59, %v1277_v37 }
 0x16b   : > { %v1419_v28 = vpop.permute.xlu1 %1418 }
 0x16c   : > { %v1403_v3 = vpop.permute.xlu0 %1402  ;;  %v2096_v52 = vsel %vm2066_vm7, %v2063_v21, %v1419_v28 }
 0x16d   : > { %v2080_v26 = vsel %vm2066_vm7, %v2047_v46, %v1403_v3 }
 0x16f   : > { %v1421_v29 = vpop.permute.xlu1 %1420 }
 0x170   : > { %v1405_v32 = vpop.permute.xlu0 %1404  ;;  %v2098_v38 = vsel %vm2066_vm7, %v2065_v30, %v1421_v29 }
 0x171   : > { %v2082_v62 = vsel %vm2066_vm7, %v2049_v8, %v1405_v32 }
 0x173   : > { %v1531_v44 = vpop.permute.xlu1 %1530 }
 0x174   : > { %v1515_v47 = vpop.permute.xlu0 %1514  ;;  %v2129_v9 = vsel %vm2099_vm8, %v2096_v52, %v1531_v44 }
 0x175   : > { %v2113_v42 = vsel %vm2099_vm8, %v2080_v26, %v1515_v47 }
 0x177   : > { %v1533_v0 = vpop.permute.xlu1 %1532 }
 0x178   : > { %v1517_v57 = vpop.permute.xlu0 %1516  ;;  %v2131_v49 = vsel %vm2099_vm8, %v2098_v38, %v1533_v0 }
 0x179   : > { %v2115_v58 = vsel %vm2099_vm8, %v2082_v62, %v1517_v57 }
 0x17b   : > { %v1803_v33 = vpop.permute.xlu1 %1802 }
 0x17c   : > { %v1787_v60 = vpop.permute.xlu0 %1786  ;;  %v2162_v50 = vsel %vm2132_vm9, %v2129_v9, %v1803_v33 }
 0x17d   : > { %v2146_v34 = vsel %vm2132_vm9, %v2113_v42, %v1787_v60 }
 0x17f   : > { %v1805_v40 = vpop.permute.xlu1 %1804 }
 0x180   : > { %v1789_v20 = vpop.permute.xlu0 %1788  ;;  %v2164_v63 = vsel %vm2132_vm9, %v2131_v49, %v1805_v40 }
 0x181   : > { %v2148_v14 = vsel %vm2132_vm9, %v2115_v58, %v1789_v20 }
 0x183   : > { %v1931_v12 = vpop.permute.xlu1 %1930 }
 0x184   : > { %v2195_v22 = vsel %vm2165_vm10, %v2162_v50, %v1931_v12  ;;  %v1915_v56 = vpop.permute.xlu0 %1914 }
 0x185   : > { %v2179_v1 = vsel %vm2165_vm10, %v2146_v34, %v1915_v56  ;;  %3076 = vmatprep.mubr.msk.bf16.mxu1 %vm2218_vm11, %v2195_v22 }
 0x186   : > { %3060 = vmatprep.mubr.msk.bf16.mxu0 %vm2218_vm11, %v2179_v1 }
 0x187   : > { %v1933_v16 = vpop.permute.xlu1 %1932 }
 0x188   : > { %v2197_v43 = vsel %vm2165_vm10, %v2164_v63, %v1933_v16  ;;  %v1917_v2 = vpop.permute.xlu0 %1916 }
 0x189   : > { %v2181_v55 = vsel %vm2165_vm10, %v2148_v14, %v1917_v2  ;;  %3077 = vmatmul.mubr.msk.bf16.gmra.mrb[12].mxu1 %vm2218_vm11, %v2197_v43 }
 0x18a   : > { %3061 = vmatmul.mubr.msk.bf16.gmra.mrb[12].mxu0 %vm2218_vm11, %v2181_v55 }
 0x1a0   : > { %v3066_v31 = vpop.f32.mrb[0].mxu1 }
 0x1a1   : > { %v3050_v41 = vpop.f32.mrb[0].mxu0  ;;  %v2441_v48 = vmul.f32 %v3066_v31, %v4561_v19  ;;  %v2353_v17 = vpop.f32.mrb[1].mxu1 }
 0x1a2   : > { %v2425_v10 = vmul.f32 %v3050_v41, %v4561_v19  ;;  %v2289_v25 = vpop.f32.mrb[1].mxu0  ;;  %v2439_v7 = vmul.f32 %v4561_v19, %v2353_v17  ;;  %v3067_v18 = vpop.f32.mrb[2].mxu1 }
 0x1a3   : > { %v2480_v6 = vadd.f32 %v4566_v23, %v2441_v48  ;;  %v2423_v61 = vmul.f32 %v4561_v19, %v2289_v25  ;;  %v3051_v5 = vpop.f32.mrb[2].mxu0  ;;  %v2442_v13 = vmul.f32 %v3067_v18, %v4561_v19  ;;  %v2356_v4 = vpop.f32.mrb[3].mxu1 }
 0x1a4   : > { %v2464_v37 = vadd.f32 %v4566_v23, %v2425_v10  ;;  %v2478_v28 = vadd.f32 %v4566_v23, %v2439_v7  ;;  %v2426_v3 = vmul.f32 %v3051_v5, %v4561_v19  ;;  %v2292_v29 = vpop.f32.mrb[3].mxu0  ;;  %v2440_v32 = vmul.f32 %v4561_v19, %v2356_v4 }
 0x1a5   : > { %vm2512_vm12 = vcmp.gt.f32.partialorder %v2480_v6, 0.0  ;;  %v2544_v44 = vmul.f32 0.1, %v2480_v6  ;;  %v2462_v47 = vadd.f32 %v4566_v23, %v2423_v61  ;;  %v2481_v0 = vadd.f32 %v4566_v23, %v2442_v13 }
 0x1a6   : > { %vm2496_vm13 = vcmp.gt.f32.partialorder %v2464_v37, 0.0  ;;  %v2528_v57 = vmul.f32 0.1, %v2464_v37  ;;  %vm2510_vm14 = vcmp.gt.f32.partialorder %v2478_v28, 0.0  ;;  %v2542_v33 = vmul.f32 0.1, %v2478_v28 }
 0x1a7   : > { %v2576_v60 = vsel %vm2512_vm12, %v2480_v6, %v2544_v44  ;;  %vm2494_vm15 = vcmp.gt.f32.partialorder %v2462_v47, 0.0  ;;  %v2526_v24 = vmul.f32 0.1, %v2462_v47  ;;  %v2465_v27 = vadd.f32 %v4566_v23, %v2426_v3 }
 0x1a8   : > { %v2560_v54 = vsel %vm2496_vm13, %v2464_v37, %v2528_v57  ;;  %2608 = vst.msk [vmem:[%s4582_s21 + $0x90] sm:$0xff] %vm1967_vm4, %v2576_v60  ;;  %v2574_v11 = vsel %vm2510_vm14, %v2478_v28, %v2542_v33  ;;  %vm2513_vm0 = vcmp.gt.f32.partialorder %v2481_v0, 0.0  ;;  %v2545_v53 = vmul.f32 0.1, %v2481_v0 }
 0x1a9   : > { %2592 = vst.msk [vmem:[%s4582_s21 + $0x10] sm:$0xff] %vm1967_vm4, %v2560_v54  ;;  %v2558_v40 = vsel %vm2494_vm15, %v2462_v47, %v2526_v24  ;;  %2606 = vst.msk [vmem:[%s4582_s21 + $0x80] sm:$0xff] %vm1967_vm4, %v2574_v11  ;;  %vm2497_vm1 = vcmp.gt.f32.partialorder %v2465_v27, 0.0  ;;  %v2529_v51 = vmul.f32 0.1, %v2465_v27  ;;  %v2424_v21 = vmul.f32 %v4561_v19, %v2292_v29 }
 0x1aa   : > { %2590 = vst.msk [vmem:[%s4582_s21] sm:$0xff] %vm1967_vm4, %v2558_v40  ;;  %v2577_v20 = vsel %vm2513_vm0, %v2481_v0, %v2545_v53  ;;  %v2479_v36 = vadd.f32 %v4566_v23, %v2440_v32 }
 0x1ab   : > { %v2561_v46 = vsel %vm2497_vm1, %v2465_v27, %v2529_v51  ;;  %2609 = vst.msk [vmem:[%s4582_s21 + $0x98] sm:$0xff] %vm1967_vm4, %v2577_v20  ;;  %v2463_v52 = vadd.f32 %v4566_v23, %v2424_v21 }
 0x1ac   : > { %2593 = vst.msk [vmem:[%s4582_s21 + $0x18] sm:$0xff] %vm1967_vm4, %v2561_v46  ;;  %vm2511_vm2 = vcmp.gt.f32.partialorder %v2479_v36, 0.0  ;;  %v2543_v15 = vmul.f32 0.1, %v2479_v36 }
 0x1ad   : > { %vm2495_vm3 = vcmp.gt.f32.partialorder %v2463_v52, 0.0  ;;  %v2527_v45 = vmul.f32 0.1, %v2463_v52 }
 0x1ae   : > { %v2575_v26 = vsel %vm2511_vm2, %v2479_v36, %v2543_v15 }
 0x1af   : > { %v2559_v9 = vsel %vm2495_vm3, %v2463_v52, %v2527_v45  ;;  %2607 = vst.msk [vmem:[%s4582_s21 + $0x88] sm:$0xff] %vm1967_vm4, %v2575_v26 }
 0x1b0   : > { %2591 = vst.msk [vmem:[%s4582_s21 + $0x8] sm:$0xff] %vm1967_vm4, %v2559_v9 }
 0x1e0   : > { %v3070_v39 = vpop.f32.mrb[4].mxu1 }
 0x1e1   : > { %v3054_v35 = vpop.f32.mrb[4].mxu0  ;;  %v2445_v42 = vmul.f32 %v3070_v39, %v4561_v19  ;;  %v2369_v50 = vpop.f32.mrb[5].mxu1 }
 0x1e2   : > { %v2429_v12 = vmul.f32 %v3054_v35, %v4561_v19  ;;  %v2305_v59 = vpop.f32.mrb[5].mxu0  ;;  %v2443_v30 = vmul.f32 %v4561_v19, %v2369_v50  ;;  %v3071_v34 = vpop.f32.mrb[6].mxu1 }
 0x1e3   : > { %v2484_v22 = vadd.f32 %v4566_v23, %v2445_v42  ;;  %v2427_v56 = vmul.f32 %v4561_v19, %v2305_v59  ;;  %v3055_v8 = vpop.f32.mrb[6].mxu0  ;;  %v2446_v38 = vmul.f32 %v3071_v34, %v4561_v19  ;;  %v2372_v1 = vpop.f32.mrb[7].mxu1 }
 0x1e4   : > { %v2468_v62 = vadd.f32 %v4566_v23, %v2429_v12  ;;  %v2482_v49 = vadd.f32 %v4566_v23, %v2443_v30  ;;  %v2430_v58 = vmul.f32 %v3055_v8, %v4561_v19  ;;  %v2308_v63 = vpop.f32.mrb[7].mxu0  ;;  %v2444_v16 = vmul.f32 %v4561_v19, %v2372_v1 }
 0x1e5   : > { %vm2516_vm5 = vcmp.gt.f32.partialorder %v2484_v22, 0.0  ;;  %v2548_v14 = vmul.f32 0.1, %v2484_v22  ;;  %v2466_v43 = vadd.f32 %v4566_v23, %v2427_v56  ;;  %v2485_v2 = vadd.f32 %v4566_v23, %v2446_v38 }
 0x1e6   : > { %vm2500_vm6 = vcmp.gt.f32.partialorder %v2468_v62, 0.0  ;;  %v2532_v55 = vmul.f32 0.1, %v2468_v62  ;;  %vm2514_vm7 = vcmp.gt.f32.partialorder %v2482_v49, 0.0  ;;  %v2546_v31 = vmul.f32 0.1, %v2482_v49 }
 0x1e7   : > { %v2580_v41 = vsel %vm2516_vm5, %v2484_v22, %v2548_v14  ;;  %vm2498_vm8 = vcmp.gt.f32.partialorder %v2466_v43, 0.0  ;;  %v2530_v48 = vmul.f32 0.1, %v2466_v43  ;;  %v2469_v17 = vadd.f32 %v4566_v23, %v2430_v58 }
 0x1e8   : > { %v2564_v10 = vsel %vm2500_vm6, %v2468_v62, %v2532_v55  ;;  %2612 = vst.msk [vmem:[%s4582_s21 + $0xb0] sm:$0xff] %vm1967_vm4, %v2580_v41  ;;  %v2578_v25 = vsel %vm2514_vm7, %v2482_v49, %v2546_v31  ;;  %vm2517_vm9 = vcmp.gt.f32.partialorder %v2485_v2, 0.0  ;;  %v2549_v7 = vmul.f32 0.1, %v2485_v2 }
 0x1e9   : > { %2596 = vst.msk [vmem:[%s4582_s21 + $0x30] sm:$0xff] %vm1967_vm4, %v2564_v10  ;;  %v2562_v18 = vsel %vm2498_vm8, %v2466_v43, %v2530_v48  ;;  %2610 = vst.msk [vmem:[%s4582_s21 + $0xa0] sm:$0xff] %vm1967_vm4, %v2578_v25  ;;  %vm2501_vm10 = vcmp.gt.f32.partialorder %v2469_v17, 0.0  ;;  %v2533_v6 = vmul.f32 0.1, %v2469_v17  ;;  %v2428_v61 = vmul.f32 %v4561_v19, %v2308_v63 }
 0x1ea   : > { %2594 = vst.msk [vmem:[%s4582_s21 + $0x20] sm:$0xff] %vm1967_vm4, %v2562_v18  ;;  %v2581_v5 = vsel %vm2517_vm9, %v2485_v2, %v2549_v7  ;;  %v2483_v13 = vadd.f32 %v4566_v23, %v2444_v16 }
 0x1eb   : > { %v2565_v4 = vsel %vm2501_vm10, %v2469_v17, %v2533_v6  ;;  %2613 = vst.msk [vmem:[%s4582_s21 + $0xb8] sm:$0xff] %vm1967_vm4, %v2581_v5  ;;  %v2467_v37 = vadd.f32 %v4566_v23, %v2428_v61 }
 0x1ec   : > { %2597 = vst.msk [vmem:[%s4582_s21 + $0x38] sm:$0xff] %vm1967_vm4, %v2565_v4  ;;  %vm2515_vm11 = vcmp.gt.f32.partialorder %v2483_v13, 0.0  ;;  %v2547_v28 = vmul.f32 0.1, %v2483_v13 }
 0x1ed   : > { %vm2499_vm12 = vcmp.gt.f32.partialorder %v2467_v37, 0.0  ;;  %v2531_v3 = vmul.f32 0.1, %v2467_v37 }
 0x1ee   : > { %v2579_v29 = vsel %vm2515_vm11, %v2483_v13, %v2547_v28 }
 0x1ef   : > { %v2563_v32 = vsel %vm2499_vm12, %v2467_v37, %v2531_v3  ;;  %2611 = vst.msk [vmem:[%s4582_s21 + $0xa8] sm:$0xff] %vm1967_vm4, %v2579_v29 }
 0x1f0   : > { %2595 = vst.msk [vmem:[%s4582_s21 + $0x28] sm:$0xff] %vm1967_vm4, %v2563_v32 }
 0x220   : > { %v3074_v44 = vpop.f32.mrb[8].mxu1 }
 0x221   : > { %v3058_v47 = vpop.f32.mrb[8].mxu0  ;;  %v2449_v0 = vmul.f32 %v3074_v44, %v4561_v19  ;;  %v2385_v57 = vpop.f32.mrb[9].mxu1 }
 0x222   : > { %v2433_v33 = vmul.f32 %v3058_v47, %v4561_v19  ;;  %v2321_v60 = vpop.f32.mrb[9].mxu0  ;;  %v2447_v24 = vmul.f32 %v4561_v19, %v2385_v57  ;;  %v3075_v27 = vpop.f32.mrb[10].mxu1 }
 0x223   : > { %v2488_v54 = vadd.f32 %v4566_v23, %v2449_v0  ;;  %v2431_v11 = vmul.f32 %v4561_v19, %v2321_v60  ;;  %v3059_v53 = vpop.f32.mrb[10].mxu0  ;;  %v2450_v40 = vmul.f32 %v3075_v27, %v4561_v19  ;;  %v2388_v51 = vpop.f32.mrb[11].mxu1 }
 0x224   : > { %v2472_v21 = vadd.f32 %v4566_v23, %v2433_v33  ;;  %v2486_v20 = vadd.f32 %v4566_v23, %v2447_v24  ;;  %v2434_v36 = vmul.f32 %v3059_v53, %v4561_v19  ;;  %v2324_v46 = vpop.f32.mrb[11].mxu0  ;;  %v2448_v52 = vmul.f32 %v4561_v19, %v2388_v51 }
 0x225   : > { %vm2520_vm13 = vcmp.gt.f32.partialorder %v2488_v54, 0.0  ;;  %v2552_v15 = vmul.f32 0.1, %v2488_v54  ;;  %v2470_v45 = vadd.f32 %v4566_v23, %v2431_v11  ;;  %v2489_v26 = vadd.f32 %v4566_v23, %v2450_v40 }
 0x226   : > { %vm2504_vm14 = vcmp.gt.f32.partialorder %v2472_v21, 0.0  ;;  %v2536_v9 = vmul.f32 0.1, %v2472_v21  ;;  %vm2518_vm15 = vcmp.gt.f32.partialorder %v2486_v20, 0.0  ;;  %v2550_v39 = vmul.f32 0.1, %v2486_v20 }
 0x227   : > { %v2584_v35 = vsel %vm2520_vm13, %v2488_v54, %v2552_v15  ;;  %vm2502_vm0 = vcmp.gt.f32.partialorder %v2470_v45, 0.0  ;;  %v2534_v42 = vmul.f32 0.1, %v2470_v45  ;;  %v2473_v50 = vadd.f32 %v4566_v23, %v2434_v36 }
 0x228   : > { %v2568_v12 = vsel %vm2504_vm14, %v2472_v21, %v2536_v9  ;;  %2616 = vst.msk [vmem:[%s4582_s21 + $0xd0] sm:$0xff] %vm1967_vm4, %v2584_v35  ;;  %v2582_v59 = vsel %vm2518_vm15, %v2486_v20, %v2550_v39  ;;  %vm2521_vm1 = vcmp.gt.f32.partialorder %v2489_v26, 0.0  ;;  %v2553_v30 = vmul.f32 0.1, %v2489_v26 }
 0x229   : > { %2600 = vst.msk [vmem:[%s4582_s21 + $0x50] sm:$0xff] %vm1967_vm4, %v2568_v12  ;;  %v2566_v34 = vsel %vm2502_vm0, %v2470_v45, %v2534_v42  ;;  %2614 = vst.msk [vmem:[%s4582_s21 + $0xc0] sm:$0xff] %vm1967_vm4, %v2582_v59  ;;  %vm2505_vm2 = vcmp.gt.f32.partialorder %v2473_v50, 0.0  ;;  %v2537_v22 = vmul.f32 0.1, %v2473_v50  ;;  %v2432_v56 = vmul.f32 %v4561_v19, %v2324_v46 }
 0x22a   : > { %2598 = vst.msk [vmem:[%s4582_s21 + $0x40] sm:$0xff] %vm1967_vm4, %v2566_v34  ;;  %v2585_v8 = vsel %vm2521_vm1, %v2489_v26, %v2553_v30  ;;  %v2487_v38 = vadd.f32 %v4566_v23, %v2448_v52 }
 0x22b   : > { %v2569_v1 = vsel %vm2505_vm2, %v2473_v50, %v2537_v22  ;;  %2617 = vst.msk [vmem:[%s4582_s21 + $0xd8] sm:$0xff] %vm1967_vm4, %v2585_v8  ;;  %v2471_v62 = vadd.f32 %v4566_v23, %v2432_v56 }
 0x22c   : > { %2601 = vst.msk [vmem:[%s4582_s21 + $0x58] sm:$0xff] %vm1967_vm4, %v2569_v1  ;;  %vm2519_vm3 = vcmp.gt.f32.partialorder %v2487_v38, 0.0  ;;  %v2551_v49 = vmul.f32 0.1, %v2487_v38 }
 0x22d   : > { %vm2503_vm5 = vcmp.gt.f32.partialorder %v2471_v62, 0.0  ;;  %v2535_v58 = vmul.f32 0.1, %v2471_v62 }
 0x22e   : > { %v2583_v63 = vsel %vm2519_vm3, %v2487_v38, %v2551_v49 }
 0x22f   : > { %v2567_v16 = vsel %vm2503_vm5, %v2471_v62, %v2535_v58  ;;  %2615 = vst.msk [vmem:[%s4582_s21 + $0xc8] sm:$0xff] %vm1967_vm4, %v2583_v63 }
 0x230   : > { %2599 = vst.msk [vmem:[%s4582_s21 + $0x48] sm:$0xff] %vm1967_vm4, %v2567_v16 }
 0x25c   : > { %v3078_v14 = vpop.f32.mrb[12].mxu1 }
 0x25d   : > { %v3062_v43 = vpop.f32.mrb[12].mxu0  ;;  %v2453_v2 = vmul.f32 %v3078_v14, %v4561_v19  ;;  %v2401_v55 = vpop.f32.mrb[13].mxu1 }
 0x25e   : > { %v2437_v31 = vmul.f32 %v3062_v43, %v4561_v19  ;;  %v2337_v41 = vpop.f32.mrb[13].mxu0  ;;  %v2451_v48 = vmul.f32 %v4561_v19, %v2401_v55  ;;  %v3079_v17 = vpop.f32.mrb[14].mxu1 }
 0x25f   : > { %v2492_v10 = vadd.f32 %v4566_v23, %v2453_v2  ;;  %v2435_v25 = vmul.f32 %v4561_v19, %v2337_v41  ;;  %v3063_v7 = vpop.f32.mrb[14].mxu0  ;;  %v2454_v18 = vmul.f32 %v3079_v17, %v4561_v19  ;;  %v2404_v6 = vpop.f32.mrb[15].mxu1 }
 0x260   : > { %v2476_v61 = vadd.f32 %v4566_v23, %v2437_v31  ;;  %v2490_v5 = vadd.f32 %v4566_v23, %v2451_v48  ;;  %v2438_v13 = vmul.f32 %v3063_v7, %v4561_v19  ;;  %v2340_v4 = vpop.f32.mrb[15].mxu0  ;;  %v2452_v37 = vmul.f32 %v4561_v19, %v2404_v6 }
 0x261   : > { %vm2524_vm6 = vcmp.gt.f32.partialorder %v2492_v10, 0.0  ;;  %v2556_v28 = vmul.f32 0.1, %v2492_v10  ;;  %v2474_v3 = vadd.f32 %v4566_v23, %v2435_v25  ;;  %v2493_v29 = vadd.f32 %v4566_v23, %v2454_v18 }
 0x262   : > { %vm2508_vm7 = vcmp.gt.f32.partialorder %v2476_v61, 0.0  ;;  %v2540_v32 = vmul.f32 0.1, %v2476_v61  ;;  %vm2522_vm8 = vcmp.gt.f32.partialorder %v2490_v5, 0.0  ;;  %v2554_v44 = vmul.f32 0.1, %v2490_v5 }
 0x263   : > { %v2588_v47 = vsel %vm2524_vm6, %v2492_v10, %v2556_v28  ;;  %vm2506_vm9 = vcmp.gt.f32.partialorder %v2474_v3, 0.0  ;;  %v2538_v0 = vmul.f32 0.1, %v2474_v3  ;;  %v2477_v57 = vadd.f32 %v4566_v23, %v2438_v13 }
 0x264   : > { %v2572_v33 = vsel %vm2508_vm7, %v2476_v61, %v2540_v32  ;;  %2620 = vst.msk [vmem:[%s4582_s21 + $0xf0] sm:$0xff] %vm1967_vm4, %v2588_v47  ;;  %v2586_v60 = vsel %vm2522_vm8, %v2490_v5, %v2554_v44  ;;  %vm2525_vm10 = vcmp.gt.f32.partialorder %v2493_v29, 0.0  ;;  %v2557_v24 = vmul.f32 0.1, %v2493_v29 }
 0x265   : > { %2604 = vst.msk [vmem:[%s4582_s21 + $0x70] sm:$0xff] %vm1967_vm4, %v2572_v33  ;;  %v2570_v27 = vsel %vm2506_vm9, %v2474_v3, %v2538_v0  ;;  %2618 = vst.msk [vmem:[%s4582_s21 + $0xe0] sm:$0xff] %vm1967_vm4, %v2586_v60  ;;  %vm2509_vm11 = vcmp.gt.f32.partialorder %v2477_v57, 0.0  ;;  %v2541_v54 = vmul.f32 0.1, %v2477_v57  ;;  %v2436_v11 = vmul.f32 %v4561_v19, %v2340_v4 }
 0x266   : > { %2602 = vst.msk [vmem:[%s4582_s21 + $0x60] sm:$0xff] %vm1967_vm4, %v2570_v27  ;;  %v2589_v53 = vsel %vm2525_vm10, %v2493_v29, %v2557_v24  ;;  %v2491_v40 = vadd.f32 %v4566_v23, %v2452_v37 }
 0x267   : > { %v2573_v51 = vsel %vm2509_vm11, %v2477_v57, %v2541_v54  ;;  %2621 = vst.msk [vmem:[%s4582_s21 + $0xf8] sm:$0xff] %vm1967_vm4, %v2589_v53  ;;  %v2475_v21 = vadd.f32 %v4566_v23, %v2436_v11 }
 0x268   : > { %2605 = vst.msk [vmem:[%s4582_s21 + $0x78] sm:$0xff] %vm1967_vm4, %v2573_v51  ;;  %vm2523_vm12 = vcmp.gt.f32.partialorder %v2491_v40, 0.0  ;;  %v2555_v20 = vmul.f32 0.1, %v2491_v40 }
 0x269   : > { %vm2507_vm13 = vcmp.gt.f32.partialorder %v2475_v21, 0.0  ;;  %v2539_v36 = vmul.f32 0.1, %v2475_v21 }
 0x26a   : > { %v2587_v46 = vsel %vm2523_vm12, %v2491_v40, %v2555_v20 }
 0x26b   : > { %v2571_v52 = vsel %vm2507_vm13, %v2475_v21, %v2539_v36  ;;  %2619 = vst.msk [vmem:[%s4582_s21 + $0xe8] sm:$0xff] %vm1967_vm4, %v2587_v46 }
 0x26c   : > { %2603 = vst.msk [vmem:[%s4582_s21 + $0x68] sm:$0xff] %vm1967_vm4, %v2571_v52 }
 0x26d PF: > { %s14_s17 = sadd.s32 1, %s3290_s17   ;;  %s4728_s15 = smov %s3286_s16 }
 0x26e   : > { %p11_p5 = scmp.ge.s32.totalorder %s14_s17, 4   ;;  %s4729_s16 = smov %s4731_s18 }
 0x270   :  { %13 = sbr.rel (!%p11_p5) target bundleno = 2 (0x2), region = 69 }

</bundles_post_ra>
